<compile_context>
chip_gen: v7x
topology: tpu7x:2x2x1
jax: 0.10.0
libtpu: 0.0.40
codegen_flags: <defaults>
</compile_context>

<pallas_src>
import math
import functools

import jax
import jax.numpy as jnp
from jax.experimental import pallas as pl
from jax.experimental.pallas import tpu as pltpu


# ----------------------------- config (small, deterministic) -----------------------------
N_EMBD = 64
N_HEAD = 4
N_LAYER = 2
BLOCK_SIZE = 32      # causal-mask / positional-embedding capacity (>= img_seq + K)
VOCAB_SIZE = 128
LORA_RANK = 4
LORA_ALPHA = 8
IMG_SEQ = 8          # (577 in the real model; small here)
K_TOKENS = 8
BATCH = 2

MXU_WEIGHT_DTYPE = jnp.bfloat16   # matmul operands; accumulation stays f32


# ----------------------------------- fused Pallas kernel ---------------------------------
def _decoder_kernel(x_ref,
                    ln1_g_ref, ln1_b_ref, attn_w_ref, attn_b_ref,
                    proj_w_ref, proj_b_ref, ln2_g_ref, ln2_b_ref,
                    fc_w_ref, fc_b_ref, mproj_w_ref, mproj_b_ref,
                    lnf_g_ref, lnf_b_ref, head_w_ref, head_b_ref,
                    o_ref, *, n_head, n_layer):
    """One batch element per grid step; everything stays resident in VMEM."""
    x = x_ref[0].astype(jnp.float32)            # (T, C) residual stream, f32
    T, C = x.shape
    hd = C // n_head
    scale = 1.0 / math.sqrt(hd)

    # Causal mask, hoisted out of the layer/head loops.
    row = jax.lax.broadcasted_iota(jnp.int32, (T, T), 0)
    col = jax.lax.broadcasted_iota(jnp.int32, (T, T), 1)
    causal = col <= row

    def layernorm(h, g, b):                      # f32 VPU math
        mean = jnp.mean(h, axis=-1, keepdims=True)
        var = jnp.mean((h - mean) ** 2, axis=-1, keepdims=True)
        return (h - mean) * jax.lax.rsqrt(var + 1e-5) * g + b

    def wmm(a, w):                               # bf16 operands, f32 accumulation on MXU
        return jnp.dot(a.astype(w.dtype), w, preferred_element_type=jnp.float32)

    gelu_c = math.sqrt(2.0 / math.pi)

    for l in range(n_layer):                     # unrolled at trace time (N_LAYER = 2)
        # ---- attention sub-block: ln1 -> fused qkv -> per-head causal attn -> proj -> residual
        h = layernorm(x, ln1_g_ref[l], ln1_b_ref[l])
        qkv = wmm(h, attn_w_ref[l]) + attn_b_ref[l]          # (T, 3C), f32
        pw = proj_w_ref[l]                                   # (C, C), bf16
        attn_out = jnp.zeros((T, C), jnp.float32)
        for hh in range(n_head):                             # head split = free lane slices
            qh = qkv[:, hh * hd:(hh + 1) * hd]
            kh = qkv[:, C + hh * hd:C + (hh + 1) * hd]
            vh = qkv[:, 2 * C + hh * hd:2 * C + (hh + 1) * hd]
            s = jnp.dot(qh, kh.T, preferred_element_type=jnp.float32) * scale
            s = jnp.where(causal, s, -1e30)                  # masked_fill(mask == 0, -inf)
            s = s - jnp.max(s, axis=-1, keepdims=True)
            p = jnp.exp(s)
            p = p * pl.reciprocal(jnp.sum(p, axis=-1, keepdims=True), approx=True)
            oh = jnp.dot(p, vh, preferred_element_type=jnp.float32)        # (T, hd)
            # Fold this head's slice of the output projection; avoids a lane concat.
            attn_out = attn_out + wmm(oh, pw[hh * hd:(hh + 1) * hd, :])
        x = x + attn_out + proj_b_ref[l]                     # residual fused in-kernel

        # ---- MLP sub-block: ln2 -> fc + tanh-GELU -> proj -> residual
        h = layernorm(x, ln2_g_ref[l], ln2_b_ref[l])
        h = wmm(h, fc_w_ref[l]) + fc_b_ref[l]
        h = 0.5 * h * (1.0 + jnp.tanh(gelu_c * (h + 0.044715 * h * h * h)))
        h = wmm(h, mproj_w_ref[l]) + mproj_b_ref[l]
        x = x + h

    # ---- final LayerNorm + (LoRA-folded, weight-tied) lm_head; V = 128 -> lane-dense store
    h = layernorm(x, lnf_g_ref[...], lnf_b_ref[...])
    logits = wmm(h, head_w_ref[...]) + head_b_ref[...]
    o_ref[0] = logits.astype(o_ref.dtype)


# -------------------------------- parameters (synthetic) ---------------------------------
def _lora_linear_params(key, din, dout, r=LORA_RANK, alpha=LORA_ALPHA):
    k1, k2, k3, k4 = jax.random.split(key, 4)
    w = jax.random.normal(k1, (din, dout), jnp.float32) * 0.02   # stored as W^T: (Din, Dout)
    b = jax.random.normal(k2, (dout,), jnp.float32) * 0.02
    a = jax.random.normal(k3, (r, din), jnp.float32) * 0.02      # lora_A
    bb = jax.random.normal(k4, (dout, r), jnp.float32) * 0.02    # lora_B
    w_eff = w + (alpha / r) * (a.T @ bb.T)                        # fold LoRA into weight
    return w_eff, b


def init_params(key):
    keys = jax.random.split(key, 3 + 4 * N_LAYER)
    ki = iter(keys)
    params = {}

    # embeddings; wte tied to lm_head base weight
    wte = jax.random.normal(next(ki), (VOCAB_SIZE, N_EMBD), jnp.float32) * 0.02
    wpe = jax.random.normal(next(ki), (BLOCK_SIZE, N_EMBD), jnp.float32) * 0.02
    params["wte"] = wte
    params["wpe"] = wpe

    # lm_head: base weight tied to wte, plus its own LoRA delta and bias
    k1, k2, k3 = jax.random.split(next(ki), 3)
    a = jax.random.normal(k1, (LORA_RANK, N_EMBD), jnp.float32) * 0.02
    bb = jax.random.normal(k2, (VOCAB_SIZE, LORA_RANK), jnp.float32) * 0.02
    params["lm_head_w"] = (wte.T + (LORA_ALPHA / LORA_RANK) * (a.T @ bb.T)
                           ).astype(MXU_WEIGHT_DTYPE)                     # (N_EMBD, VOCAB)
    params["lm_head_b"] = (jax.random.normal(k3, (VOCAB_SIZE,), jnp.float32) * 0.02
                           ).reshape(1, -1)                               # kernel shape (1, V)

    params["ln_f_g"] = jnp.ones((1, N_EMBD), jnp.float32)
    params["ln_f_b"] = jnp.zeros((1, N_EMBD), jnp.float32)

    # per-layer params, stacked along a leading layer axis so the fused kernel takes them
    # as a handful of arrays instead of 12 * N_LAYER separate inputs.
    ln1_g, ln1_b, ln2_g, ln2_b = [], [], [], []
    attn_w, attn_b, proj_w, proj_b = [], [], [], []
    fc_w, fc_b, mproj_w, mproj_b = [], [], [], []
    for _ in range(N_LAYER):
        ln1_g.append(jnp.ones((1, N_EMBD), jnp.float32))
        ln1_b.append(jnp.zeros((1, N_EMBD), jnp.float32))
        ln2_g.append(jnp.ones((1, N_EMBD), jnp.float32))
        ln2_b.append(jnp.zeros((1, N_EMBD), jnp.float32))
        w, b = _lora_linear_params(next(ki), N_EMBD, 3 * N_EMBD)
        attn_w.append(w); attn_b.append(b.reshape(1, -1))
        w, b = _lora_linear_params(next(ki), N_EMBD, N_EMBD)
        proj_w.append(w); proj_b.append(b.reshape(1, -1))
        w, b = _lora_linear_params(next(ki), N_EMBD, 4 * N_EMBD)
        fc_w.append(w); fc_b.append(b.reshape(1, -1))
        w, b = _lora_linear_params(next(ki), 4 * N_EMBD, N_EMBD)
        mproj_w.append(w); mproj_b.append(b.reshape(1, -1))

    params["ln1_g"] = jnp.stack(ln1_g); params["ln1_b"] = jnp.stack(ln1_b)
    params["ln2_g"] = jnp.stack(ln2_g); params["ln2_b"] = jnp.stack(ln2_b)
    params["attn_w"] = jnp.stack(attn_w).astype(MXU_WEIGHT_DTYPE)
    params["attn_b"] = jnp.stack(attn_b)
    params["proj_w"] = jnp.stack(proj_w).astype(MXU_WEIGHT_DTYPE)
    params["proj_b"] = jnp.stack(proj_b)
    params["fc_w"] = jnp.stack(fc_w).astype(MXU_WEIGHT_DTYPE)
    params["fc_b"] = jnp.stack(fc_b)
    params["mproj_w"] = jnp.stack(mproj_w).astype(MXU_WEIGHT_DTYPE)
    params["mproj_b"] = jnp.stack(mproj_b)
    return params


# ------------------------------------- forward pass --------------------------------------
def decoder_forward(params, token_id, img_embed):
    B = token_id.shape[0]
    K = min(token_id.shape[1], BLOCK_SIZE)
    token_id = token_id[:, :K]
    pos = jnp.arange(K, dtype=jnp.int32)

    # TODO(synk): embedding-table gathers stay as JAX glue (data-dependent gather).
    text_embed = params["wte"][token_id] + params["wpe"][pos][None, :, :]
    x = jnp.concatenate([img_embed, text_embed], axis=1)                 # (B, T, C), f32

    _, T, C = x.shape
    V = VOCAB_SIZE
    L = N_LAYER

    const3 = lambda shape: pl.BlockSpec(shape, lambda b: (0, 0, 0))
    const2 = lambda shape: pl.BlockSpec(shape, lambda b: (0, 0))

    # NOTE: at real-model sizes (vocab ~50k, n_embd 768, seq 577+) the lm_head / fc weights
    # would need a tiled grid + vmem_limit_bytes; at these toy sizes everything (<1 MiB)
    # fits VMEM, so a single fully-fused invocation per batch element is optimal.
    logits = pl.pallas_call(
        functools.partial(_decoder_kernel, n_head=N_HEAD, n_layer=N_LAYER),
        out_shape=jax.ShapeDtypeStruct((B, T, V), jnp.float32),
        grid=(B,),
        in_specs=[
            pl.BlockSpec((1, T, C), lambda b: (b, 0, 0)),                 # x: one batch row
            const3((L, 1, C)), const3((L, 1, C)),                         # ln1 g/b
            const3((L, C, 3 * C)), const3((L, 1, 3 * C)),                 # attn w/b
            const3((L, C, C)), const3((L, 1, C)),                         # proj w/b
            const3((L, 1, C)), const3((L, 1, C)),                         # ln2 g/b
            const3((L, C, 4 * C)), const3((L, 1, 4 * C)),                 # fc w/b
            const3((L, 4 * C, C)), const3((L, 1, C)),                     # mproj w/b
            const2((1, C)), const2((1, C)),                               # ln_f g/b
            const2((C, V)), const2((1, V)),                               # lm_head w/b
        ],
        out_specs=pl.BlockSpec((1, T, V), lambda b: (b, 0, 0)),
        compiler_params=pltpu.CompilerParams(
            dimension_semantics=("parallel",)),                           # shard batch on v7x's 2 TCs
    )(x,
      params["ln1_g"], params["ln1_b"], params["attn_w"], params["attn_b"],
      params["proj_w"], params["proj_b"], params["ln2_g"], params["ln2_b"],
      params["fc_w"], params["fc_b"], params["mproj_w"], params["mproj_b"],
      params["ln_f_g"], params["ln_f_b"], params["lm_head_w"], params["lm_head_b"])

    return logits[:, -K:, :]


# ----------------------------------------- main -------------------------------------------
if __name__ == "__main__":
    key = jax.random.PRNGKey(0)
    kp, kt, ki = jax.random.split(key, 3)

    params = init_params(kp)
    token_id = jax.random.randint(kt, (BATCH, K_TOKENS), 0, VOCAB_SIZE, dtype=jnp.int32)
    img_embed = jax.random.normal(ki, (BATCH, IMG_SEQ, N_EMBD), jnp.float32)

    fwd = jax.jit(decoder_forward)
    out = fwd(params, token_id, img_embed)
    jax.block_until_ready(out)
    assert out.shape == (BATCH, K_TOKENS, VOCAB_SIZE), out.shape
    print("KERNEL_OK")
</pallas_src>

<mosaic_0001>
module attributes {stable_mosaic.version = 11 : i64} {
  func.func @_decoder_kernel(%arg0: i32, %arg1: memref<1x16x64xf32, #tpu.memory_space<vmem>>, %arg2: memref<2x1x64xf32, #tpu.memory_space<vmem>>, %arg3: memref<2x1x64xf32, #tpu.memory_space<vmem>>, %arg4: memref<2x64x192xbf16, #tpu.memory_space<vmem>>, %arg5: memref<2x1x192xf32, #tpu.memory_space<vmem>>, %arg6: memref<2x64x64xbf16, #tpu.memory_space<vmem>>, %arg7: memref<2x1x64xf32, #tpu.memory_space<vmem>>, %arg8: memref<2x1x64xf32, #tpu.memory_space<vmem>>, %arg9: memref<2x1x64xf32, #tpu.memory_space<vmem>>, %arg10: memref<2x64x256xbf16, #tpu.memory_space<vmem>>, %arg11: memref<2x1x256xf32, #tpu.memory_space<vmem>>, %arg12: memref<2x256x64xbf16, #tpu.memory_space<vmem>>, %arg13: memref<2x1x64xf32, #tpu.memory_space<vmem>>, %arg14: memref<1x64xf32, #tpu.memory_space<vmem>>, %arg15: memref<1x64xf32, #tpu.memory_space<vmem>>, %arg16: memref<64x128xbf16, #tpu.memory_space<vmem>>, %arg17: memref<1x128xf32, #tpu.memory_space<vmem>>, %arg18: memref<1x16x128xf32, #tpu.memory_space<vmem>>) attributes {dimension_semantics = [#tpu.dimension_semantics<parallel>], iteration_bounds = array<i64: 2>, scalar_prefetch = 0 : i64, scratch_operands = 0 : i64, tpu.core_type = #tpu.core_type<tc>, window_params = [{transform_indices = @transform_0, window_bounds = array<i64: 1, 16, 64>}, {pipeline_mode = #tpu.pipeline_mode<synchronous>, transform_indices = @transform_1, window_bounds = array<i64: 2, 1, 64>}, {pipeline_mode = #tpu.pipeline_mode<synchronous>, transform_indices = @transform_2, window_bounds = array<i64: 2, 1, 64>}, {pipeline_mode = #tpu.pipeline_mode<synchronous>, transform_indices = @transform_3, window_bounds = array<i64: 2, 64, 192>}, {pipeline_mode = #tpu.pipeline_mode<synchronous>, transform_indices = @transform_4, window_bounds = array<i64: 2, 1, 192>}, {pipeline_mode = #tpu.pipeline_mode<synchronous>, transform_indices = @transform_5, window_bounds = array<i64: 2, 64, 64>}, {pipeline_mode = #tpu.pipeline_mode<synchronous>, transform_indices = @transform_6, window_bounds = array<i64: 2, 1, 64>}, {pipeline_mode = #tpu.pipeline_mode<synchronous>, transform_indices = @transform_7, window_bounds = array<i64: 2, 1, 64>}, {pipeline_mode = #tpu.pipeline_mode<synchronous>, transform_indices = @transform_8, window_bounds = array<i64: 2, 1, 64>}, {pipeline_mode = #tpu.pipeline_mode<synchronous>, transform_indices = @transform_9, window_bounds = array<i64: 2, 64, 256>}, {pipeline_mode = #tpu.pipeline_mode<synchronous>, transform_indices = @transform_10, window_bounds = array<i64: 2, 1, 256>}, {pipeline_mode = #tpu.pipeline_mode<synchronous>, transform_indices = @transform_11, window_bounds = array<i64: 2, 256, 64>}, {pipeline_mode = #tpu.pipeline_mode<synchronous>, transform_indices = @transform_12, window_bounds = array<i64: 2, 1, 64>}, {pipeline_mode = #tpu.pipeline_mode<synchronous>, transform_indices = @transform_13, window_bounds = array<i64: 1, 64>}, {pipeline_mode = #tpu.pipeline_mode<synchronous>, transform_indices = @transform_14, window_bounds = array<i64: 1, 64>}, {pipeline_mode = #tpu.pipeline_mode<synchronous>, transform_indices = @transform_15, window_bounds = array<i64: 64, 128>}, {pipeline_mode = #tpu.pipeline_mode<synchronous>, transform_indices = @transform_16, window_bounds = array<i64: 1, 128>}, {transform_indices = @transform_17, window_bounds = array<i64: 1, 16, 128>}]} {
    %c0 = arith.constant 0 : index
    %c0_0 = arith.constant 0 : index
    %c0_1 = arith.constant 0 : index
    %0 = vector.load %arg1[%c0, %c0_0, %c0_1] : memref<1x16x64xf32, #tpu.memory_space<vmem>>, vector<1x16x64xf32>
    %1 = vector.shape_cast %0 : vector<1x16x64xf32> to vector<16x64xf32>
    %2 = tpu.iota {dimensions = array<i32: 0>} : vector<16x16xi32>
    %3 = tpu.iota {dimensions = array<i32: 1>} : vector<16x16xi32>
    %4 = arith.cmpi sle, %3, %2 : vector<16x16xi32>
    %c0_2 = arith.constant 0 : index
    %c0_3 = arith.constant 0 : index
    %c0_4 = arith.constant 0 : index
    %5 = vector.load %arg2[%c0_2, %c0_3, %c0_4] : memref<2x1x64xf32, #tpu.memory_space<vmem>>, vector<1x1x64xf32>
    %6 = vector.shape_cast %5 : vector<1x1x64xf32> to vector<1x64xf32>
    %c0_5 = arith.constant 0 : index
    %c0_6 = arith.constant 0 : index
    %c0_7 = arith.constant 0 : index
    %7 = vector.load %arg3[%c0_5, %c0_6, %c0_7] : memref<2x1x64xf32, #tpu.memory_space<vmem>>, vector<1x1x64xf32>
    %8 = vector.shape_cast %7 : vector<1x1x64xf32> to vector<1x64xf32>
    %cst = arith.constant dense<0.000000e+00> : vector<16xf32>
    %9 = vector.multi_reduction <add>, %1, %cst [1] : vector<16x64xf32> to vector<16xf32>
    %10 = vector.shape_cast %9 : vector<16xf32> to vector<16x1xf32>
    %cst_8 = arith.constant 6.400000e+01 : f32
    %11 = vector.broadcast %cst_8 : f32 to vector<16x1xf32>
    %12 = arith.divf %10, %11 : vector<16x1xf32>
    %13 = vector.broadcast %12 : vector<16x1xf32> to vector<16x64xf32>
    %14 = arith.subf %1, %13 : vector<16x64xf32>
    %15 = arith.mulf %14, %14 : vector<16x64xf32>
    %cst_9 = arith.constant dense<0.000000e+00> : vector<16xf32>
    %16 = vector.multi_reduction <add>, %15, %cst_9 [1] : vector<16x64xf32> to vector<16xf32>
    %17 = vector.shape_cast %16 : vector<16xf32> to vector<16x1xf32>
    %cst_10 = arith.constant 6.400000e+01 : f32
    %18 = vector.broadcast %cst_10 : f32 to vector<16x1xf32>
    %19 = arith.divf %17, %18 : vector<16x1xf32>
    %20 = vector.broadcast %12 : vector<16x1xf32> to vector<16x64xf32>
    %21 = arith.subf %1, %20 : vector<16x64xf32>
    %cst_11 = arith.constant 9.99999974E-6 : f32
    %22 = vector.broadcast %cst_11 : f32 to vector<16x1xf32>
    %23 = arith.addf %19, %22 : vector<16x1xf32>
    %24 = math.rsqrt %23 : vector<16x1xf32>
    %25 = vector.broadcast %24 : vector<16x1xf32> to vector<16x64xf32>
    %26 = arith.mulf %21, %25 : vector<16x64xf32>
    %27 = vector.broadcast %6 : vector<1x64xf32> to vector<16x64xf32>
    %28 = arith.mulf %26, %27 : vector<16x64xf32>
    %29 = vector.broadcast %8 : vector<1x64xf32> to vector<16x64xf32>
    %30 = arith.addf %28, %29 : vector<16x64xf32>
    %c0_12 = arith.constant 0 : index
    %c0_13 = arith.constant 0 : index
    %c0_14 = arith.constant 0 : index
    %31 = vector.load %arg4[%c0_12, %c0_13, %c0_14] : memref<2x64x192xbf16, #tpu.memory_space<vmem>>, vector<1x64x192xbf16>
    %32 = vector.shape_cast %31 : vector<1x64x192xbf16> to vector<64x192xbf16>
    %33 = arith.truncf %30 : vector<16x64xf32> to vector<16x64xbf16>
    %cst_15 = arith.constant dense<0.000000e+00> : vector<16x192xf32>
    %34 = tpu.matmul %33, %32, %cst_15 {dimension_numbers = #tpu.dot_dimension_numbers<[1], [0], [0], [1], [0, 0, 1, 1], [], []>} : vector<16x64xbf16>, vector<64x192xbf16>, vector<16x192xf32> -> vector<16x192xf32>
    %c0_16 = arith.constant 0 : index
    %c0_17 = arith.constant 0 : index
    %c0_18 = arith.constant 0 : index
    %35 = vector.load %arg5[%c0_16, %c0_17, %c0_18] : memref<2x1x192xf32, #tpu.memory_space<vmem>>, vector<1x1x192xf32>
    %36 = vector.shape_cast %35 : vector<1x1x192xf32> to vector<1x192xf32>
    %37 = vector.broadcast %36 : vector<1x192xf32> to vector<16x192xf32>
    %38 = arith.addf %34, %37 : vector<16x192xf32>
    %c0_19 = arith.constant 0 : index
    %c0_20 = arith.constant 0 : index
    %c0_21 = arith.constant 0 : index
    %39 = vector.load %arg6[%c0_19, %c0_20, %c0_21] : memref<2x64x64xbf16, #tpu.memory_space<vmem>>, vector<1x64x64xbf16>
    %40 = vector.shape_cast %39 : vector<1x64x64xbf16> to vector<64x64xbf16>
    %cst_22 = arith.constant 0.000000e+00 : f32
    %41 = vector.broadcast %cst_22 : f32 to vector<16x64xf32>
    %42 = vector.extract_strided_slice %38 {offsets = [0, 0], sizes = [16, 16], strides = [1, 1]} : vector<16x192xf32> to vector<16x16xf32>
    %43 = vector.extract_strided_slice %38 {offsets = [0, 64], sizes = [16, 16], strides = [1, 1]} : vector<16x192xf32> to vector<16x16xf32>
    %44 = vector.extract_strided_slice %38 {offsets = [0, 128], sizes = [16, 16], strides = [1, 1]} : vector<16x192xf32> to vector<16x16xf32>
    %45 = tpu.transpose %43, [1, 0] : vector<16x16xf32> -> vector<16x16xf32>
    %cst_23 = arith.constant dense<0.000000e+00> : vector<16x16xf32>
    %46 = tpu.matmul %42, %45, %cst_23 {dimension_numbers = #tpu.dot_dimension_numbers<[1], [0], [0], [1], [0, 0, 1, 1], [], []>} : vector<16x16xf32>, vector<16x16xf32>, vector<16x16xf32> -> vector<16x16xf32>
    %cst_24 = arith.constant 2.500000e-01 : f32
    %47 = vector.broadcast %cst_24 : f32 to vector<16x16xf32>
    %48 = arith.mulf %46, %47 : vector<16x16xf32>
    %cst_25 = arith.constant -1.000000e+30 : f32
    %49 = vector.broadcast %cst_25 : f32 to vector<16x16xf32>
    %50 = arith.select %4, %48, %49 : vector<16x16xi1>, vector<16x16xf32>
    %cst_26 = arith.constant dense<0xFF800000> : vector<16xf32>
    %51 = vector.multi_reduction <maximumf>, %50, %cst_26 [1] : vector<16x16xf32> to vector<16xf32>
    %52 = vector.shape_cast %51 : vector<16xf32> to vector<16x1xf32>
    %53 = vector.broadcast %52 : vector<16x1xf32> to vector<16x16xf32>
    %54 = arith.subf %50, %53 : vector<16x16xf32>
    %55 = math.exp %54 : vector<16x16xf32>
    %cst_27 = arith.constant dense<0.000000e+00> : vector<16xf32>
    %56 = vector.multi_reduction <add>, %55, %cst_27 [1] : vector<16x16xf32> to vector<16xf32>
    %57 = vector.shape_cast %56 : vector<16xf32> to vector<16x1xf32>
    %58 = tpu.reciprocal %57 {approx = true} : vector<16x1xf32> -> vector<16x1xf32>
    %59 = vector.broadcast %58 : vector<16x1xf32> to vector<16x16xf32>
    %60 = arith.mulf %55, %59 : vector<16x16xf32>
    %cst_28 = arith.constant dense<0.000000e+00> : vector<16x16xf32>
    %61 = tpu.matmul %60, %44, %cst_28 {dimension_numbers = #tpu.dot_dimension_numbers<[1], [0], [0], [1], [0, 0, 1, 1], [], []>} : vector<16x16xf32>, vector<16x16xf32>, vector<16x16xf32> -> vector<16x16xf32>
    %62 = vector.extract_strided_slice %40 {offsets = [0, 0], sizes = [16, 64], strides = [1, 1]} : vector<64x64xbf16> to vector<16x64xbf16>
    %63 = arith.truncf %61 : vector<16x16xf32> to vector<16x16xbf16>
    %cst_29 = arith.constant dense<0.000000e+00> : vector<16x64xf32>
    %64 = tpu.matmul %63, %62, %cst_29 {dimension_numbers = #tpu.dot_dimension_numbers<[1], [0], [0], [1], [0, 0, 1, 1], [], []>} : vector<16x16xbf16>, vector<16x64xbf16>, vector<16x64xf32> -> vector<16x64xf32>
    %65 = arith.addf %41, %64 : vector<16x64xf32>
    %66 = vector.extract_strided_slice %38 {offsets = [0, 16], sizes = [16, 16], strides = [1, 1]} : vector<16x192xf32> to vector<16x16xf32>
    %67 = vector.extract_strided_slice %38 {offsets = [0, 80], sizes = [16, 16], strides = [1, 1]} : vector<16x192xf32> to vector<16x16xf32>
    %68 = vector.extract_strided_slice %38 {offsets = [0, 144], sizes = [16, 16], strides = [1, 1]} : vector<16x192xf32> to vector<16x16xf32>
    %69 = tpu.transpose %67, [1, 0] : vector<16x16xf32> -> vector<16x16xf32>
    %cst_30 = arith.constant dense<0.000000e+00> : vector<16x16xf32>
    %70 = tpu.matmul %66, %69, %cst_30 {dimension_numbers = #tpu.dot_dimension_numbers<[1], [0], [0], [1], [0, 0, 1, 1], [], []>} : vector<16x16xf32>, vector<16x16xf32>, vector<16x16xf32> -> vector<16x16xf32>
    %cst_31 = arith.constant 2.500000e-01 : f32
    %71 = vector.broadcast %cst_31 : f32 to vector<16x16xf32>
    %72 = arith.mulf %70, %71 : vector<16x16xf32>
    %cst_32 = arith.constant -1.000000e+30 : f32
    %73 = vector.broadcast %cst_32 : f32 to vector<16x16xf32>
    %74 = arith.select %4, %72, %73 : vector<16x16xi1>, vector<16x16xf32>
    %cst_33 = arith.constant dense<0xFF800000> : vector<16xf32>
    %75 = vector.multi_reduction <maximumf>, %74, %cst_33 [1] : vector<16x16xf32> to vector<16xf32>
    %76 = vector.shape_cast %75 : vector<16xf32> to vector<16x1xf32>
    %77 = vector.broadcast %76 : vector<16x1xf32> to vector<16x16xf32>
    %78 = arith.subf %74, %77 : vector<16x16xf32>
    %79 = math.exp %78 : vector<16x16xf32>
    %cst_34 = arith.constant dense<0.000000e+00> : vector<16xf32>
    %80 = vector.multi_reduction <add>, %79, %cst_34 [1] : vector<16x16xf32> to vector<16xf32>
    %81 = vector.shape_cast %80 : vector<16xf32> to vector<16x1xf32>
    %82 = tpu.reciprocal %81 {approx = true} : vector<16x1xf32> -> vector<16x1xf32>
    %83 = vector.broadcast %82 : vector<16x1xf32> to vector<16x16xf32>
    %84 = arith.mulf %79, %83 : vector<16x16xf32>
    %cst_35 = arith.constant dense<0.000000e+00> : vector<16x16xf32>
    %85 = tpu.matmul %84, %68, %cst_35 {dimension_numbers = #tpu.dot_dimension_numbers<[1], [0], [0], [1], [0, 0, 1, 1], [], []>} : vector<16x16xf32>, vector<16x16xf32>, vector<16x16xf32> -> vector<16x16xf32>
    %86 = vector.extract_strided_slice %40 {offsets = [16, 0], sizes = [16, 64], strides = [1, 1]} : vector<64x64xbf16> to vector<16x64xbf16>
    %87 = arith.truncf %85 : vector<16x16xf32> to vector<16x16xbf16>
    %cst_36 = arith.constant dense<0.000000e+00> : vector<16x64xf32>
    %88 = tpu.matmul %87, %86, %cst_36 {dimension_numbers = #tpu.dot_dimension_numbers<[1], [0], [0], [1], [0, 0, 1, 1], [], []>} : vector<16x16xbf16>, vector<16x64xbf16>, vector<16x64xf32> -> vector<16x64xf32>
    %89 = arith.addf %65, %88 : vector<16x64xf32>
    %90 = vector.extract_strided_slice %38 {offsets = [0, 32], sizes = [16, 16], strides = [1, 1]} : vector<16x192xf32> to vector<16x16xf32>
    %91 = vector.extract_strided_slice %38 {offsets = [0, 96], sizes = [16, 16], strides = [1, 1]} : vector<16x192xf32> to vector<16x16xf32>
    %92 = vector.extract_strided_slice %38 {offsets = [0, 160], sizes = [16, 16], strides = [1, 1]} : vector<16x192xf32> to vector<16x16xf32>
    %93 = tpu.transpose %91, [1, 0] : vector<16x16xf32> -> vector<16x16xf32>
    %cst_37 = arith.constant dense<0.000000e+00> : vector<16x16xf32>
    %94 = tpu.matmul %90, %93, %cst_37 {dimension_numbers = #tpu.dot_dimension_numbers<[1], [0], [0], [1], [0, 0, 1, 1], [], []>} : vector<16x16xf32>, vector<16x16xf32>, vector<16x16xf32> -> vector<16x16xf32>
    %cst_38 = arith.constant 2.500000e-01 : f32
    %95 = vector.broadcast %cst_38 : f32 to vector<16x16xf32>
    %96 = arith.mulf %94, %95 : vector<16x16xf32>
    %cst_39 = arith.constant -1.000000e+30 : f32
    %97 = vector.broadcast %cst_39 : f32 to vector<16x16xf32>
    %98 = arith.select %4, %96, %97 : vector<16x16xi1>, vector<16x16xf32>
    %cst_40 = arith.constant dense<0xFF800000> : vector<16xf32>
    %99 = vector.multi_reduction <maximumf>, %98, %cst_40 [1] : vector<16x16xf32> to vector<16xf32>
    %100 = vector.shape_cast %99 : vector<16xf32> to vector<16x1xf32>
    %101 = vector.broadcast %100 : vector<16x1xf32> to vector<16x16xf32>
    %102 = arith.subf %98, %101 : vector<16x16xf32>
    %103 = math.exp %102 : vector<16x16xf32>
    %cst_41 = arith.constant dense<0.000000e+00> : vector<16xf32>
    %104 = vector.multi_reduction <add>, %103, %cst_41 [1] : vector<16x16xf32> to vector<16xf32>
    %105 = vector.shape_cast %104 : vector<16xf32> to vector<16x1xf32>
    %106 = tpu.reciprocal %105 {approx = true} : vector<16x1xf32> -> vector<16x1xf32>
    %107 = vector.broadcast %106 : vector<16x1xf32> to vector<16x16xf32>
    %108 = arith.mulf %103, %107 : vector<16x16xf32>
    %cst_42 = arith.constant dense<0.000000e+00> : vector<16x16xf32>
    %109 = tpu.matmul %108, %92, %cst_42 {dimension_numbers = #tpu.dot_dimension_numbers<[1], [0], [0], [1], [0, 0, 1, 1], [], []>} : vector<16x16xf32>, vector<16x16xf32>, vector<16x16xf32> -> vector<16x16xf32>
    %110 = vector.extract_strided_slice %40 {offsets = [32, 0], sizes = [16, 64], strides = [1, 1]} : vector<64x64xbf16> to vector<16x64xbf16>
    %111 = arith.truncf %109 : vector<16x16xf32> to vector<16x16xbf16>
    %cst_43 = arith.constant dense<0.000000e+00> : vector<16x64xf32>
    %112 = tpu.matmul %111, %110, %cst_43 {dimension_numbers = #tpu.dot_dimension_numbers<[1], [0], [0], [1], [0, 0, 1, 1], [], []>} : vector<16x16xbf16>, vector<16x64xbf16>, vector<16x64xf32> -> vector<16x64xf32>
    %113 = arith.addf %89, %112 : vector<16x64xf32>
    %114 = vector.extract_strided_slice %38 {offsets = [0, 48], sizes = [16, 16], strides = [1, 1]} : vector<16x192xf32> to vector<16x16xf32>
    %115 = vector.extract_strided_slice %38 {offsets = [0, 112], sizes = [16, 16], strides = [1, 1]} : vector<16x192xf32> to vector<16x16xf32>
    %116 = vector.extract_strided_slice %38 {offsets = [0, 176], sizes = [16, 16], strides = [1, 1]} : vector<16x192xf32> to vector<16x16xf32>
    %117 = tpu.transpose %115, [1, 0] : vector<16x16xf32> -> vector<16x16xf32>
    %cst_44 = arith.constant dense<0.000000e+00> : vector<16x16xf32>
    %118 = tpu.matmul %114, %117, %cst_44 {dimension_numbers = #tpu.dot_dimension_numbers<[1], [0], [0], [1], [0, 0, 1, 1], [], []>} : vector<16x16xf32>, vector<16x16xf32>, vector<16x16xf32> -> vector<16x16xf32>
    %cst_45 = arith.constant 2.500000e-01 : f32
    %119 = vector.broadcast %cst_45 : f32 to vector<16x16xf32>
    %120 = arith.mulf %118, %119 : vector<16x16xf32>
    %cst_46 = arith.constant -1.000000e+30 : f32
    %121 = vector.broadcast %cst_46 : f32 to vector<16x16xf32>
    %122 = arith.select %4, %120, %121 : vector<16x16xi1>, vector<16x16xf32>
    %cst_47 = arith.constant dense<0xFF800000> : vector<16xf32>
    %123 = vector.multi_reduction <maximumf>, %122, %cst_47 [1] : vector<16x16xf32> to vector<16xf32>
    %124 = vector.shape_cast %123 : vector<16xf32> to vector<16x1xf32>
    %125 = vector.broadcast %124 : vector<16x1xf32> to vector<16x16xf32>
    %126 = arith.subf %122, %125 : vector<16x16xf32>
    %127 = math.exp %126 : vector<16x16xf32>
    %cst_48 = arith.constant dense<0.000000e+00> : vector<16xf32>
    %128 = vector.multi_reduction <add>, %127, %cst_48 [1] : vector<16x16xf32> to vector<16xf32>
    %129 = vector.shape_cast %128 : vector<16xf32> to vector<16x1xf32>
    %130 = tpu.reciprocal %129 {approx = true} : vector<16x1xf32> -> vector<16x1xf32>
    %131 = vector.broadcast %130 : vector<16x1xf32> to vector<16x16xf32>
    %132 = arith.mulf %127, %131 : vector<16x16xf32>
    %cst_49 = arith.constant dense<0.000000e+00> : vector<16x16xf32>
    %133 = tpu.matmul %132, %116, %cst_49 {dimension_numbers = #tpu.dot_dimension_numbers<[1], [0], [0], [1], [0, 0, 1, 1], [], []>} : vector<16x16xf32>, vector<16x16xf32>, vector<16x16xf32> -> vector<16x16xf32>
    %134 = vector.extract_strided_slice %40 {offsets = [48, 0], sizes = [16, 64], strides = [1, 1]} : vector<64x64xbf16> to vector<16x64xbf16>
    %135 = arith.truncf %133 : vector<16x16xf32> to vector<16x16xbf16>
    %cst_50 = arith.constant dense<0.000000e+00> : vector<16x64xf32>
    %136 = tpu.matmul %135, %134, %cst_50 {dimension_numbers = #tpu.dot_dimension_numbers<[1], [0], [0], [1], [0, 0, 1, 1], [], []>} : vector<16x16xbf16>, vector<16x64xbf16>, vector<16x64xf32> -> vector<16x64xf32>
    %137 = arith.addf %113, %136 : vector<16x64xf32>
    %138 = arith.addf %1, %137 : vector<16x64xf32>
    %c0_51 = arith.constant 0 : index
    %c0_52 = arith.constant 0 : index
    %c0_53 = arith.constant 0 : index
    %139 = vector.load %arg7[%c0_51, %c0_52, %c0_53] : memref<2x1x64xf32, #tpu.memory_space<vmem>>, vector<1x1x64xf32>
    %140 = vector.shape_cast %139 : vector<1x1x64xf32> to vector<1x64xf32>
    %141 = vector.broadcast %140 : vector<1x64xf32> to vector<16x64xf32>
    %142 = arith.addf %138, %141 : vector<16x64xf32>
    %c0_54 = arith.constant 0 : index
    %c0_55 = arith.constant 0 : index
    %c0_56 = arith.constant 0 : index
    %143 = vector.load %arg8[%c0_54, %c0_55, %c0_56] : memref<2x1x64xf32, #tpu.memory_space<vmem>>, vector<1x1x64xf32>
    %144 = vector.shape_cast %143 : vector<1x1x64xf32> to vector<1x64xf32>
    %c0_57 = arith.constant 0 : index
    %c0_58 = arith.constant 0 : index
    %c0_59 = arith.constant 0 : index
    %145 = vector.load %arg9[%c0_57, %c0_58, %c0_59] : memref<2x1x64xf32, #tpu.memory_space<vmem>>, vector<1x1x64xf32>
    %146 = vector.shape_cast %145 : vector<1x1x64xf32> to vector<1x64xf32>
    %cst_60 = arith.constant dense<0.000000e+00> : vector<16xf32>
    %147 = vector.multi_reduction <add>, %142, %cst_60 [1] : vector<16x64xf32> to vector<16xf32>
    %148 = vector.shape_cast %147 : vector<16xf32> to vector<16x1xf32>
    %cst_61 = arith.constant 6.400000e+01 : f32
    %149 = vector.broadcast %cst_61 : f32 to vector<16x1xf32>
    %150 = arith.divf %148, %149 : vector<16x1xf32>
    %151 = vector.broadcast %150 : vector<16x1xf32> to vector<16x64xf32>
    %152 = arith.subf %142, %151 : vector<16x64xf32>
    %153 = arith.mulf %152, %152 : vector<16x64xf32>
    %cst_62 = arith.constant dense<0.000000e+00> : vector<16xf32>
    %154 = vector.multi_reduction <add>, %153, %cst_62 [1] : vector<16x64xf32> to vector<16xf32>
    %155 = vector.shape_cast %154 : vector<16xf32> to vector<16x1xf32>
    %cst_63 = arith.constant 6.400000e+01 : f32
    %156 = vector.broadcast %cst_63 : f32 to vector<16x1xf32>
    %157 = arith.divf %155, %156 : vector<16x1xf32>
    %158 = vector.broadcast %150 : vector<16x1xf32> to vector<16x64xf32>
    %159 = arith.subf %142, %158 : vector<16x64xf32>
    %cst_64 = arith.constant 9.99999974E-6 : f32
    %160 = vector.broadcast %cst_64 : f32 to vector<16x1xf32>
    %161 = arith.addf %157, %160 : vector<16x1xf32>
    %162 = math.rsqrt %161 : vector<16x1xf32>
    %163 = vector.broadcast %162 : vector<16x1xf32> to vector<16x64xf32>
    %164 = arith.mulf %159, %163 : vector<16x64xf32>
    %165 = vector.broadcast %144 : vector<1x64xf32> to vector<16x64xf32>
    %166 = arith.mulf %164, %165 : vector<16x64xf32>
    %167 = vector.broadcast %146 : vector<1x64xf32> to vector<16x64xf32>
    %168 = arith.addf %166, %167 : vector<16x64xf32>
    %c0_65 = arith.constant 0 : index
    %c0_66 = arith.constant 0 : index
    %c0_67 = arith.constant 0 : index
    %169 = vector.load %arg10[%c0_65, %c0_66, %c0_67] : memref<2x64x256xbf16, #tpu.memory_space<vmem>>, vector<1x64x256xbf16>
    %170 = vector.shape_cast %169 : vector<1x64x256xbf16> to vector<64x256xbf16>
    %171 = arith.truncf %168 : vector<16x64xf32> to vector<16x64xbf16>
    %cst_68 = arith.constant dense<0.000000e+00> : vector<16x256xf32>
    %172 = tpu.matmul %171, %170, %cst_68 {dimension_numbers = #tpu.dot_dimension_numbers<[1], [0], [0], [1], [0, 0, 1, 1], [], []>} : vector<16x64xbf16>, vector<64x256xbf16>, vector<16x256xf32> -> vector<16x256xf32>
    %c0_69 = arith.constant 0 : index
    %c0_70 = arith.constant 0 : index
    %c0_71 = arith.constant 0 : index
    %173 = vector.load %arg11[%c0_69, %c0_70, %c0_71] : memref<2x1x256xf32, #tpu.memory_space<vmem>>, vector<1x1x256xf32>
    %174 = vector.shape_cast %173 : vector<1x1x256xf32> to vector<1x256xf32>
    %175 = vector.broadcast %174 : vector<1x256xf32> to vector<16x256xf32>
    %176 = arith.addf %172, %175 : vector<16x256xf32>
    %cst_72 = arith.constant 5.000000e-01 : f32
    %177 = vector.broadcast %cst_72 : f32 to vector<16x256xf32>
    %178 = arith.mulf %177, %176 : vector<16x256xf32>
    %cst_73 = arith.constant 4.471500e-02 : f32
    %179 = vector.broadcast %cst_73 : f32 to vector<16x256xf32>
    %180 = arith.mulf %179, %176 : vector<16x256xf32>
    %181 = arith.mulf %180, %176 : vector<16x256xf32>
    %182 = arith.mulf %181, %176 : vector<16x256xf32>
    %183 = arith.addf %176, %182 : vector<16x256xf32>
    %cst_74 = arith.constant 0.797884583 : f32
    %184 = vector.broadcast %cst_74 : f32 to vector<16x256xf32>
    %185 = arith.mulf %184, %183 : vector<16x256xf32>
    %186 = math.tanh %185 : vector<16x256xf32>
    %cst_75 = arith.constant 1.000000e+00 : f32
    %187 = vector.broadcast %cst_75 : f32 to vector<16x256xf32>
    %188 = arith.addf %187, %186 : vector<16x256xf32>
    %189 = arith.mulf %178, %188 : vector<16x256xf32>
    %c0_76 = arith.constant 0 : index
    %c0_77 = arith.constant 0 : index
    %c0_78 = arith.constant 0 : index
    %190 = vector.load %arg12[%c0_76, %c0_77, %c0_78] : memref<2x256x64xbf16, #tpu.memory_space<vmem>>, vector<1x256x64xbf16>
    %191 = vector.shape_cast %190 : vector<1x256x64xbf16> to vector<256x64xbf16>
    %192 = arith.truncf %189 : vector<16x256xf32> to vector<16x256xbf16>
    %cst_79 = arith.constant dense<0.000000e+00> : vector<16x64xf32>
    %193 = tpu.matmul %192, %191, %cst_79 {dimension_numbers = #tpu.dot_dimension_numbers<[1], [0], [0], [1], [0, 0, 1, 1], [], []>} : vector<16x256xbf16>, vector<256x64xbf16>, vector<16x64xf32> -> vector<16x64xf32>
    %c0_80 = arith.constant 0 : index
    %c0_81 = arith.constant 0 : index
    %c0_82 = arith.constant 0 : index
    %194 = vector.load %arg13[%c0_80, %c0_81, %c0_82] : memref<2x1x64xf32, #tpu.memory_space<vmem>>, vector<1x1x64xf32>
    %195 = vector.shape_cast %194 : vector<1x1x64xf32> to vector<1x64xf32>
    %196 = vector.broadcast %195 : vector<1x64xf32> to vector<16x64xf32>
    %197 = arith.addf %193, %196 : vector<16x64xf32>
    %198 = arith.addf %142, %197 : vector<16x64xf32>
    %c1 = arith.constant 1 : index
    %c0_83 = arith.constant 0 : index
    %c0_84 = arith.constant 0 : index
    %199 = vector.load %arg2[%c1, %c0_83, %c0_84] : memref<2x1x64xf32, #tpu.memory_space<vmem>>, vector<1x1x64xf32>
    %200 = vector.shape_cast %199 : vector<1x1x64xf32> to vector<1x64xf32>
    %c1_85 = arith.constant 1 : index
    %c0_86 = arith.constant 0 : index
    %c0_87 = arith.constant 0 : index
    %201 = vector.load %arg3[%c1_85, %c0_86, %c0_87] : memref<2x1x64xf32, #tpu.memory_space<vmem>>, vector<1x1x64xf32>
    %202 = vector.shape_cast %201 : vector<1x1x64xf32> to vector<1x64xf32>
    %cst_88 = arith.constant dense<0.000000e+00> : vector<16xf32>
    %203 = vector.multi_reduction <add>, %198, %cst_88 [1] : vector<16x64xf32> to vector<16xf32>
    %204 = vector.shape_cast %203 : vector<16xf32> to vector<16x1xf32>
    %cst_89 = arith.constant 6.400000e+01 : f32
    %205 = vector.broadcast %cst_89 : f32 to vector<16x1xf32>
    %206 = arith.divf %204, %205 : vector<16x1xf32>
    %207 = vector.broadcast %206 : vector<16x1xf32> to vector<16x64xf32>
    %208 = arith.subf %198, %207 : vector<16x64xf32>
    %209 = arith.mulf %208, %208 : vector<16x64xf32>
    %cst_90 = arith.constant dense<0.000000e+00> : vector<16xf32>
    %210 = vector.multi_reduction <add>, %209, %cst_90 [1] : vector<16x64xf32> to vector<16xf32>
    %211 = vector.shape_cast %210 : vector<16xf32> to vector<16x1xf32>
    %cst_91 = arith.constant 6.400000e+01 : f32
    %212 = vector.broadcast %cst_91 : f32 to vector<16x1xf32>
    %213 = arith.divf %211, %212 : vector<16x1xf32>
    %214 = vector.broadcast %206 : vector<16x1xf32> to vector<16x64xf32>
    %215 = arith.subf %198, %214 : vector<16x64xf32>
    %cst_92 = arith.constant 9.99999974E-6 : f32
    %216 = vector.broadcast %cst_92 : f32 to vector<16x1xf32>
    %217 = arith.addf %213, %216 : vector<16x1xf32>
    %218 = math.rsqrt %217 : vector<16x1xf32>
    %219 = vector.broadcast %218 : vector<16x1xf32> to vector<16x64xf32>
    %220 = arith.mulf %215, %219 : vector<16x64xf32>
    %221 = vector.broadcast %200 : vector<1x64xf32> to vector<16x64xf32>
    %222 = arith.mulf %220, %221 : vector<16x64xf32>
    %223 = vector.broadcast %202 : vector<1x64xf32> to vector<16x64xf32>
    %224 = arith.addf %222, %223 : vector<16x64xf32>
    %c1_93 = arith.constant 1 : index
    %c0_94 = arith.constant 0 : index
    %c0_95 = arith.constant 0 : index
    %225 = vector.load %arg4[%c1_93, %c0_94, %c0_95] : memref<2x64x192xbf16, #tpu.memory_space<vmem>>, vector<1x64x192xbf16>
    %226 = vector.shape_cast %225 : vector<1x64x192xbf16> to vector<64x192xbf16>
    %227 = arith.truncf %224 : vector<16x64xf32> to vector<16x64xbf16>
    %cst_96 = arith.constant dense<0.000000e+00> : vector<16x192xf32>
    %228 = tpu.matmul %227, %226, %cst_96 {dimension_numbers = #tpu.dot_dimension_numbers<[1], [0], [0], [1], [0, 0, 1, 1], [], []>} : vector<16x64xbf16>, vector<64x192xbf16>, vector<16x192xf32> -> vector<16x192xf32>
    %c1_97 = arith.constant 1 : index
    %c0_98 = arith.constant 0 : index
    %c0_99 = arith.constant 0 : index
    %229 = vector.load %arg5[%c1_97, %c0_98, %c0_99] : memref<2x1x192xf32, #tpu.memory_space<vmem>>, vector<1x1x192xf32>
    %230 = vector.shape_cast %229 : vector<1x1x192xf32> to vector<1x192xf32>
    %231 = vector.broadcast %230 : vector<1x192xf32> to vector<16x192xf32>
    %232 = arith.addf %228, %231 : vector<16x192xf32>
    %c1_100 = arith.constant 1 : index
    %c0_101 = arith.constant 0 : index
    %c0_102 = arith.constant 0 : index
    %233 = vector.load %arg6[%c1_100, %c0_101, %c0_102] : memref<2x64x64xbf16, #tpu.memory_space<vmem>>, vector<1x64x64xbf16>
    %234 = vector.shape_cast %233 : vector<1x64x64xbf16> to vector<64x64xbf16>
    %cst_103 = arith.constant 0.000000e+00 : f32
    %235 = vector.broadcast %cst_103 : f32 to vector<16x64xf32>
    %236 = vector.extract_strided_slice %232 {offsets = [0, 0], sizes = [16, 16], strides = [1, 1]} : vector<16x192xf32> to vector<16x16xf32>
    %237 = vector.extract_strided_slice %232 {offsets = [0, 64], sizes = [16, 16], strides = [1, 1]} : vector<16x192xf32> to vector<16x16xf32>
    %238 = vector.extract_strided_slice %232 {offsets = [0, 128], sizes = [16, 16], strides = [1, 1]} : vector<16x192xf32> to vector<16x16xf32>
    %239 = tpu.transpose %237, [1, 0] : vector<16x16xf32> -> vector<16x16xf32>
    %cst_104 = arith.constant dense<0.000000e+00> : vector<16x16xf32>
    %240 = tpu.matmul %236, %239, %cst_104 {dimension_numbers = #tpu.dot_dimension_numbers<[1], [0], [0], [1], [0, 0, 1, 1], [], []>} : vector<16x16xf32>, vector<16x16xf32>, vector<16x16xf32> -> vector<16x16xf32>
    %cst_105 = arith.constant 2.500000e-01 : f32
    %241 = vector.broadcast %cst_105 : f32 to vector<16x16xf32>
    %242 = arith.mulf %240, %241 : vector<16x16xf32>
    %cst_106 = arith.constant -1.000000e+30 : f32
    %243 = vector.broadcast %cst_106 : f32 to vector<16x16xf32>
    %244 = arith.select %4, %242, %243 : vector<16x16xi1>, vector<16x16xf32>
    %cst_107 = arith.constant dense<0xFF800000> : vector<16xf32>
    %245 = vector.multi_reduction <maximumf>, %244, %cst_107 [1] : vector<16x16xf32> to vector<16xf32>
    %246 = vector.shape_cast %245 : vector<16xf32> to vector<16x1xf32>
    %247 = vector.broadcast %246 : vector<16x1xf32> to vector<16x16xf32>
    %248 = arith.subf %244, %247 : vector<16x16xf32>
    %249 = math.exp %248 : vector<16x16xf32>
    %cst_108 = arith.constant dense<0.000000e+00> : vector<16xf32>
    %250 = vector.multi_reduction <add>, %249, %cst_108 [1] : vector<16x16xf32> to vector<16xf32>
    %251 = vector.shape_cast %250 : vector<16xf32> to vector<16x1xf32>
    %252 = tpu.reciprocal %251 {approx = true} : vector<16x1xf32> -> vector<16x1xf32>
    %253 = vector.broadcast %252 : vector<16x1xf32> to vector<16x16xf32>
    %254 = arith.mulf %249, %253 : vector<16x16xf32>
    %cst_109 = arith.constant dense<0.000000e+00> : vector<16x16xf32>
    %255 = tpu.matmul %254, %238, %cst_109 {dimension_numbers = #tpu.dot_dimension_numbers<[1], [0], [0], [1], [0, 0, 1, 1], [], []>} : vector<16x16xf32>, vector<16x16xf32>, vector<16x16xf32> -> vector<16x16xf32>
    %256 = vector.extract_strided_slice %234 {offsets = [0, 0], sizes = [16, 64], strides = [1, 1]} : vector<64x64xbf16> to vector<16x64xbf16>
    %257 = arith.truncf %255 : vector<16x16xf32> to vector<16x16xbf16>
    %cst_110 = arith.constant dense<0.000000e+00> : vector<16x64xf32>
    %258 = tpu.matmul %257, %256, %cst_110 {dimension_numbers = #tpu.dot_dimension_numbers<[1], [0], [0], [1], [0, 0, 1, 1], [], []>} : vector<16x16xbf16>, vector<16x64xbf16>, vector<16x64xf32> -> vector<16x64xf32>
    %259 = arith.addf %235, %258 : vector<16x64xf32>
    %260 = vector.extract_strided_slice %232 {offsets = [0, 16], sizes = [16, 16], strides = [1, 1]} : vector<16x192xf32> to vector<16x16xf32>
    %261 = vector.extract_strided_slice %232 {offsets = [0, 80], sizes = [16, 16], strides = [1, 1]} : vector<16x192xf32> to vector<16x16xf32>
    %262 = vector.extract_strided_slice %232 {offsets = [0, 144], sizes = [16, 16], strides = [1, 1]} : vector<16x192xf32> to vector<16x16xf32>
    %263 = tpu.transpose %261, [1, 0] : vector<16x16xf32> -> vector<16x16xf32>
    %cst_111 = arith.constant dense<0.000000e+00> : vector<16x16xf32>
    %264 = tpu.matmul %260, %263, %cst_111 {dimension_numbers = #tpu.dot_dimension_numbers<[1], [0], [0], [1], [0, 0, 1, 1], [], []>} : vector<16x16xf32>, vector<16x16xf32>, vector<16x16xf32> -> vector<16x16xf32>
    %cst_112 = arith.constant 2.500000e-01 : f32
    %265 = vector.broadcast %cst_112 : f32 to vector<16x16xf32>
    %266 = arith.mulf %264, %265 : vector<16x16xf32>
    %cst_113 = arith.constant -1.000000e+30 : f32
    %267 = vector.broadcast %cst_113 : f32 to vector<16x16xf32>
    %268 = arith.select %4, %266, %267 : vector<16x16xi1>, vector<16x16xf32>
    %cst_114 = arith.constant dense<0xFF800000> : vector<16xf32>
    %269 = vector.multi_reduction <maximumf>, %268, %cst_114 [1] : vector<16x16xf32> to vector<16xf32>
    %270 = vector.shape_cast %269 : vector<16xf32> to vector<16x1xf32>
    %271 = vector.broadcast %270 : vector<16x1xf32> to vector<16x16xf32>
    %272 = arith.subf %268, %271 : vector<16x16xf32>
    %273 = math.exp %272 : vector<16x16xf32>
    %cst_115 = arith.constant dense<0.000000e+00> : vector<16xf32>
    %274 = vector.multi_reduction <add>, %273, %cst_115 [1] : vector<16x16xf32> to vector<16xf32>
    %275 = vector.shape_cast %274 : vector<16xf32> to vector<16x1xf32>
    %276 = tpu.reciprocal %275 {approx = true} : vector<16x1xf32> -> vector<16x1xf32>
    %277 = vector.broadcast %276 : vector<16x1xf32> to vector<16x16xf32>
    %278 = arith.mulf %273, %277 : vector<16x16xf32>
    %cst_116 = arith.constant dense<0.000000e+00> : vector<16x16xf32>
    %279 = tpu.matmul %278, %262, %cst_116 {dimension_numbers = #tpu.dot_dimension_numbers<[1], [0], [0], [1], [0, 0, 1, 1], [], []>} : vector<16x16xf32>, vector<16x16xf32>, vector<16x16xf32> -> vector<16x16xf32>
    %280 = vector.extract_strided_slice %234 {offsets = [16, 0], sizes = [16, 64], strides = [1, 1]} : vector<64x64xbf16> to vector<16x64xbf16>
    %281 = arith.truncf %279 : vector<16x16xf32> to vector<16x16xbf16>
    %cst_117 = arith.constant dense<0.000000e+00> : vector<16x64xf32>
    %282 = tpu.matmul %281, %280, %cst_117 {dimension_numbers = #tpu.dot_dimension_numbers<[1], [0], [0], [1], [0, 0, 1, 1], [], []>} : vector<16x16xbf16>, vector<16x64xbf16>, vector<16x64xf32> -> vector<16x64xf32>
    %283 = arith.addf %259, %282 : vector<16x64xf32>
    %284 = vector.extract_strided_slice %232 {offsets = [0, 32], sizes = [16, 16], strides = [1, 1]} : vector<16x192xf32> to vector<16x16xf32>
    %285 = vector.extract_strided_slice %232 {offsets = [0, 96], sizes = [16, 16], strides = [1, 1]} : vector<16x192xf32> to vector<16x16xf32>
    %286 = vector.extract_strided_slice %232 {offsets = [0, 160], sizes = [16, 16], strides = [1, 1]} : vector<16x192xf32> to vector<16x16xf32>
    %287 = tpu.transpose %285, [1, 0] : vector<16x16xf32> -> vector<16x16xf32>
    %cst_118 = arith.constant dense<0.000000e+00> : vector<16x16xf32>
    %288 = tpu.matmul %284, %287, %cst_118 {dimension_numbers = #tpu.dot_dimension_numbers<[1], [0], [0], [1], [0, 0, 1, 1], [], []>} : vector<16x16xf32>, vector<16x16xf32>, vector<16x16xf32> -> vector<16x16xf32>
    %cst_119 = arith.constant 2.500000e-01 : f32
    %289 = vector.broadcast %cst_119 : f32 to vector<16x16xf32>
    %290 = arith.mulf %288, %289 : vector<16x16xf32>
    %cst_120 = arith.constant -1.000000e+30 : f32
    %291 = vector.broadcast %cst_120 : f32 to vector<16x16xf32>
    %292 = arith.select %4, %290, %291 : vector<16x16xi1>, vector<16x16xf32>
    %cst_121 = arith.constant dense<0xFF800000> : vector<16xf32>
    %293 = vector.multi_reduction <maximumf>, %292, %cst_121 [1] : vector<16x16xf32> to vector<16xf32>
    %294 = vector.shape_cast %293 : vector<16xf32> to vector<16x1xf32>
    %295 = vector.broadcast %294 : vector<16x1xf32> to vector<16x16xf32>
    %296 = arith.subf %292, %295 : vector<16x16xf32>
    %297 = math.exp %296 : vector<16x16xf32>
    %cst_122 = arith.constant dense<0.000000e+00> : vector<16xf32>
    %298 = vector.multi_reduction <add>, %297, %cst_122 [1] : vector<16x16xf32> to vector<16xf32>
    %299 = vector.shape_cast %298 : vector<16xf32> to vector<16x1xf32>
    %300 = tpu.reciprocal %299 {approx = true} : vector<16x1xf32> -> vector<16x1xf32>
    %301 = vector.broadcast %300 : vector<16x1xf32> to vector<16x16xf32>
    %302 = arith.mulf %297, %301 : vector<16x16xf32>
    %cst_123 = arith.constant dense<0.000000e+00> : vector<16x16xf32>
    %303 = tpu.matmul %302, %286, %cst_123 {dimension_numbers = #tpu.dot_dimension_numbers<[1], [0], [0], [1], [0, 0, 1, 1], [], []>} : vector<16x16xf32>, vector<16x16xf32>, vector<16x16xf32> -> vector<16x16xf32>
    %304 = vector.extract_strided_slice %234 {offsets = [32, 0], sizes = [16, 64], strides = [1, 1]} : vector<64x64xbf16> to vector<16x64xbf16>
    %305 = arith.truncf %303 : vector<16x16xf32> to vector<16x16xbf16>
    %cst_124 = arith.constant dense<0.000000e+00> : vector<16x64xf32>
    %306 = tpu.matmul %305, %304, %cst_124 {dimension_numbers = #tpu.dot_dimension_numbers<[1], [0], [0], [1], [0, 0, 1, 1], [], []>} : vector<16x16xbf16>, vector<16x64xbf16>, vector<16x64xf32> -> vector<16x64xf32>
    %307 = arith.addf %283, %306 : vector<16x64xf32>
    %308 = vector.extract_strided_slice %232 {offsets = [0, 48], sizes = [16, 16], strides = [1, 1]} : vector<16x192xf32> to vector<16x16xf32>
    %309 = vector.extract_strided_slice %232 {offsets = [0, 112], sizes = [16, 16], strides = [1, 1]} : vector<16x192xf32> to vector<16x16xf32>
    %310 = vector.extract_strided_slice %232 {offsets = [0, 176], sizes = [16, 16], strides = [1, 1]} : vector<16x192xf32> to vector<16x16xf32>
    %311 = tpu.transpose %309, [1, 0] : vector<16x16xf32> -> vector<16x16xf32>
    %cst_125 = arith.constant dense<0.000000e+00> : vector<16x16xf32>
    %312 = tpu.matmul %308, %311, %cst_125 {dimension_numbers = #tpu.dot_dimension_numbers<[1], [0], [0], [1], [0, 0, 1, 1], [], []>} : vector<16x16xf32>, vector<16x16xf32>, vector<16x16xf32> -> vector<16x16xf32>
    %cst_126 = arith.constant 2.500000e-01 : f32
    %313 = vector.broadcast %cst_126 : f32 to vector<16x16xf32>
    %314 = arith.mulf %312, %313 : vector<16x16xf32>
    %cst_127 = arith.constant -1.000000e+30 : f32
    %315 = vector.broadcast %cst_127 : f32 to vector<16x16xf32>
    %316 = arith.select %4, %314, %315 : vector<16x16xi1>, vector<16x16xf32>
    %cst_128 = arith.constant dense<0xFF800000> : vector<16xf32>
    %317 = vector.multi_reduction <maximumf>, %316, %cst_128 [1] : vector<16x16xf32> to vector<16xf32>
    %318 = vector.shape_cast %317 : vector<16xf32> to vector<16x1xf32>
    %319 = vector.broadcast %318 : vector<16x1xf32> to vector<16x16xf32>
    %320 = arith.subf %316, %319 : vector<16x16xf32>
    %321 = math.exp %320 : vector<16x16xf32>
    %cst_129 = arith.constant dense<0.000000e+00> : vector<16xf32>
    %322 = vector.multi_reduction <add>, %321, %cst_129 [1] : vector<16x16xf32> to vector<16xf32>
    %323 = vector.shape_cast %322 : vector<16xf32> to vector<16x1xf32>
    %324 = tpu.reciprocal %323 {approx = true} : vector<16x1xf32> -> vector<16x1xf32>
    %325 = vector.broadcast %324 : vector<16x1xf32> to vector<16x16xf32>
    %326 = arith.mulf %321, %325 : vector<16x16xf32>
    %cst_130 = arith.constant dense<0.000000e+00> : vector<16x16xf32>
    %327 = tpu.matmul %326, %310, %cst_130 {dimension_numbers = #tpu.dot_dimension_numbers<[1], [0], [0], [1], [0, 0, 1, 1], [], []>} : vector<16x16xf32>, vector<16x16xf32>, vector<16x16xf32> -> vector<16x16xf32>
    %328 = vector.extract_strided_slice %234 {offsets = [48, 0], sizes = [16, 64], strides = [1, 1]} : vector<64x64xbf16> to vector<16x64xbf16>
    %329 = arith.truncf %327 : vector<16x16xf32> to vector<16x16xbf16>
    %cst_131 = arith.constant dense<0.000000e+00> : vector<16x64xf32>
    %330 = tpu.matmul %329, %328, %cst_131 {dimension_numbers = #tpu.dot_dimension_numbers<[1], [0], [0], [1], [0, 0, 1, 1], [], []>} : vector<16x16xbf16>, vector<16x64xbf16>, vector<16x64xf32> -> vector<16x64xf32>
    %331 = arith.addf %307, %330 : vector<16x64xf32>
    %332 = arith.addf %198, %331 : vector<16x64xf32>
    %c1_132 = arith.constant 1 : index
    %c0_133 = arith.constant 0 : index
    %c0_134 = arith.constant 0 : index
    %333 = vector.load %arg7[%c1_132, %c0_133, %c0_134] : memref<2x1x64xf32, #tpu.memory_space<vmem>>, vector<1x1x64xf32>
    %334 = vector.shape_cast %333 : vector<1x1x64xf32> to vector<1x64xf32>
    %335 = vector.broadcast %334 : vector<1x64xf32> to vector<16x64xf32>
    %336 = arith.addf %332, %335 : vector<16x64xf32>
    %c1_135 = arith.constant 1 : index
    %c0_136 = arith.constant 0 : index
    %c0_137 = arith.constant 0 : index
    %337 = vector.load %arg8[%c1_135, %c0_136, %c0_137] : memref<2x1x64xf32, #tpu.memory_space<vmem>>, vector<1x1x64xf32>
    %338 = vector.shape_cast %337 : vector<1x1x64xf32> to vector<1x64xf32>
    %c1_138 = arith.constant 1 : index
    %c0_139 = arith.constant 0 : index
    %c0_140 = arith.constant 0 : index
    %339 = vector.load %arg9[%c1_138, %c0_139, %c0_140] : memref<2x1x64xf32, #tpu.memory_space<vmem>>, vector<1x1x64xf32>
    %340 = vector.shape_cast %339 : vector<1x1x64xf32> to vector<1x64xf32>
    %cst_141 = arith.constant dense<0.000000e+00> : vector<16xf32>
    %341 = vector.multi_reduction <add>, %336, %cst_141 [1] : vector<16x64xf32> to vector<16xf32>
    %342 = vector.shape_cast %341 : vector<16xf32> to vector<16x1xf32>
    %cst_142 = arith.constant 6.400000e+01 : f32
    %343 = vector.broadcast %cst_142 : f32 to vector<16x1xf32>
    %344 = arith.divf %342, %343 : vector<16x1xf32>
    %345 = vector.broadcast %344 : vector<16x1xf32> to vector<16x64xf32>
    %346 = arith.subf %336, %345 : vector<16x64xf32>
    %347 = arith.mulf %346, %346 : vector<16x64xf32>
    %cst_143 = arith.constant dense<0.000000e+00> : vector<16xf32>
    %348 = vector.multi_reduction <add>, %347, %cst_143 [1] : vector<16x64xf32> to vector<16xf32>
    %349 = vector.shape_cast %348 : vector<16xf32> to vector<16x1xf32>
    %cst_144 = arith.constant 6.400000e+01 : f32
    %350 = vector.broadcast %cst_144 : f32 to vector<16x1xf32>
    %351 = arith.divf %349, %350 : vector<16x1xf32>
    %352 = vector.broadcast %344 : vector<16x1xf32> to vector<16x64xf32>
    %353 = arith.subf %336, %352 : vector<16x64xf32>
    %cst_145 = arith.constant 9.99999974E-6 : f32
    %354 = vector.broadcast %cst_145 : f32 to vector<16x1xf32>
    %355 = arith.addf %351, %354 : vector<16x1xf32>
    %356 = math.rsqrt %355 : vector<16x1xf32>
    %357 = vector.broadcast %356 : vector<16x1xf32> to vector<16x64xf32>
    %358 = arith.mulf %353, %357 : vector<16x64xf32>
    %359 = vector.broadcast %338 : vector<1x64xf32> to vector<16x64xf32>
    %360 = arith.mulf %358, %359 : vector<16x64xf32>
    %361 = vector.broadcast %340 : vector<1x64xf32> to vector<16x64xf32>
    %362 = arith.addf %360, %361 : vector<16x64xf32>
    %c1_146 = arith.constant 1 : index
    %c0_147 = arith.constant 0 : index
    %c0_148 = arith.constant 0 : index
    %363 = vector.load %arg10[%c1_146, %c0_147, %c0_148] : memref<2x64x256xbf16, #tpu.memory_space<vmem>>, vector<1x64x256xbf16>
    %364 = vector.shape_cast %363 : vector<1x64x256xbf16> to vector<64x256xbf16>
    %365 = arith.truncf %362 : vector<16x64xf32> to vector<16x64xbf16>
    %cst_149 = arith.constant dense<0.000000e+00> : vector<16x256xf32>
    %366 = tpu.matmul %365, %364, %cst_149 {dimension_numbers = #tpu.dot_dimension_numbers<[1], [0], [0], [1], [0, 0, 1, 1], [], []>} : vector<16x64xbf16>, vector<64x256xbf16>, vector<16x256xf32> -> vector<16x256xf32>
    %c1_150 = arith.constant 1 : index
    %c0_151 = arith.constant 0 : index
    %c0_152 = arith.constant 0 : index
    %367 = vector.load %arg11[%c1_150, %c0_151, %c0_152] : memref<2x1x256xf32, #tpu.memory_space<vmem>>, vector<1x1x256xf32>
    %368 = vector.shape_cast %367 : vector<1x1x256xf32> to vector<1x256xf32>
    %369 = vector.broadcast %368 : vector<1x256xf32> to vector<16x256xf32>
    %370 = arith.addf %366, %369 : vector<16x256xf32>
    %cst_153 = arith.constant 5.000000e-01 : f32
    %371 = vector.broadcast %cst_153 : f32 to vector<16x256xf32>
    %372 = arith.mulf %371, %370 : vector<16x256xf32>
    %cst_154 = arith.constant 4.471500e-02 : f32
    %373 = vector.broadcast %cst_154 : f32 to vector<16x256xf32>
    %374 = arith.mulf %373, %370 : vector<16x256xf32>
    %375 = arith.mulf %374, %370 : vector<16x256xf32>
    %376 = arith.mulf %375, %370 : vector<16x256xf32>
    %377 = arith.addf %370, %376 : vector<16x256xf32>
    %cst_155 = arith.constant 0.797884583 : f32
    %378 = vector.broadcast %cst_155 : f32 to vector<16x256xf32>
    %379 = arith.mulf %378, %377 : vector<16x256xf32>
    %380 = math.tanh %379 : vector<16x256xf32>
    %cst_156 = arith.constant 1.000000e+00 : f32
    %381 = vector.broadcast %cst_156 : f32 to vector<16x256xf32>
    %382 = arith.addf %381, %380 : vector<16x256xf32>
    %383 = arith.mulf %372, %382 : vector<16x256xf32>
    %c1_157 = arith.constant 1 : index
    %c0_158 = arith.constant 0 : index
    %c0_159 = arith.constant 0 : index
    %384 = vector.load %arg12[%c1_157, %c0_158, %c0_159] : memref<2x256x64xbf16, #tpu.memory_space<vmem>>, vector<1x256x64xbf16>
    %385 = vector.shape_cast %384 : vector<1x256x64xbf16> to vector<256x64xbf16>
    %386 = arith.truncf %383 : vector<16x256xf32> to vector<16x256xbf16>
    %cst_160 = arith.constant dense<0.000000e+00> : vector<16x64xf32>
    %387 = tpu.matmul %386, %385, %cst_160 {dimension_numbers = #tpu.dot_dimension_numbers<[1], [0], [0], [1], [0, 0, 1, 1], [], []>} : vector<16x256xbf16>, vector<256x64xbf16>, vector<16x64xf32> -> vector<16x64xf32>
    %c1_161 = arith.constant 1 : index
    %c0_162 = arith.constant 0 : index
    %c0_163 = arith.constant 0 : index
    %388 = vector.load %arg13[%c1_161, %c0_162, %c0_163] : memref<2x1x64xf32, #tpu.memory_space<vmem>>, vector<1x1x64xf32>
    %389 = vector.shape_cast %388 : vector<1x1x64xf32> to vector<1x64xf32>
    %390 = vector.broadcast %389 : vector<1x64xf32> to vector<16x64xf32>
    %391 = arith.addf %387, %390 : vector<16x64xf32>
    %392 = arith.addf %336, %391 : vector<16x64xf32>
    %c0_164 = arith.constant 0 : index
    %c0_165 = arith.constant 0 : index
    %393 = vector.load %arg14[%c0_164, %c0_165] : memref<1x64xf32, #tpu.memory_space<vmem>>, vector<1x64xf32>
    %c0_166 = arith.constant 0 : index
    %c0_167 = arith.constant 0 : index
    %394 = vector.load %arg15[%c0_166, %c0_167] : memref<1x64xf32, #tpu.memory_space<vmem>>, vector<1x64xf32>
    %cst_168 = arith.constant dense<0.000000e+00> : vector<16xf32>
    %395 = vector.multi_reduction <add>, %392, %cst_168 [1] : vector<16x64xf32> to vector<16xf32>
    %396 = vector.shape_cast %395 : vector<16xf32> to vector<16x1xf32>
    %cst_169 = arith.constant 6.400000e+01 : f32
    %397 = vector.broadcast %cst_169 : f32 to vector<16x1xf32>
    %398 = arith.divf %396, %397 : vector<16x1xf32>
    %399 = vector.broadcast %398 : vector<16x1xf32> to vector<16x64xf32>
    %400 = arith.subf %392, %399 : vector<16x64xf32>
    %401 = arith.mulf %400, %400 : vector<16x64xf32>
    %cst_170 = arith.constant dense<0.000000e+00> : vector<16xf32>
    %402 = vector.multi_reduction <add>, %401, %cst_170 [1] : vector<16x64xf32> to vector<16xf32>
    %403 = vector.shape_cast %402 : vector<16xf32> to vector<16x1xf32>
    %cst_171 = arith.constant 6.400000e+01 : f32
    %404 = vector.broadcast %cst_171 : f32 to vector<16x1xf32>
    %405 = arith.divf %403, %404 : vector<16x1xf32>
    %406 = vector.broadcast %398 : vector<16x1xf32> to vector<16x64xf32>
    %407 = arith.subf %392, %406 : vector<16x64xf32>
    %cst_172 = arith.constant 9.99999974E-6 : f32
    %408 = vector.broadcast %cst_172 : f32 to vector<16x1xf32>
    %409 = arith.addf %405, %408 : vector<16x1xf32>
    %410 = math.rsqrt %409 : vector<16x1xf32>
    %411 = vector.broadcast %410 : vector<16x1xf32> to vector<16x64xf32>
    %412 = arith.mulf %407, %411 : vector<16x64xf32>
    %413 = vector.broadcast %393 : vector<1x64xf32> to vector<16x64xf32>
    %414 = arith.mulf %412, %413 : vector<16x64xf32>
    %415 = vector.broadcast %394 : vector<1x64xf32> to vector<16x64xf32>
    %416 = arith.addf %414, %415 : vector<16x64xf32>
    %c0_173 = arith.constant 0 : index
    %c0_174 = arith.constant 0 : index
    %417 = vector.load %arg16[%c0_173, %c0_174] : memref<64x128xbf16, #tpu.memory_space<vmem>>, vector<64x128xbf16>
    %418 = arith.truncf %416 : vector<16x64xf32> to vector<16x64xbf16>
    %cst_175 = arith.constant dense<0.000000e+00> : vector<16x128xf32>
    %419 = tpu.matmul %418, %417, %cst_175 {dimension_numbers = #tpu.dot_dimension_numbers<[1], [0], [0], [1], [0, 0, 1, 1], [], []>} : vector<16x64xbf16>, vector<64x128xbf16>, vector<16x128xf32> -> vector<16x128xf32>
    %c0_176 = arith.constant 0 : index
    %c0_177 = arith.constant 0 : index
    %420 = vector.load %arg17[%c0_176, %c0_177] : memref<1x128xf32, #tpu.memory_space<vmem>>, vector<1x128xf32>
    %421 = vector.broadcast %420 : vector<1x128xf32> to vector<16x128xf32>
    %422 = arith.addf %419, %421 : vector<16x128xf32>
    %c0_178 = arith.constant 0 : index
    %c0_179 = arith.constant 0 : index
    %c0_180 = arith.constant 0 : index
    %423 = vector.load %arg18[%c0_178, %c0_179, %c0_180] : memref<1x16x128xf32, #tpu.memory_space<vmem>>, vector<1x16x128xf32>
    %424 = vector.shape_cast %423 : vector<1x16x128xf32> to vector<16x128xf32>
    %425 = vector.shape_cast %422 : vector<16x128xf32> to vector<1x16x128xf32>
    tpu.vector_store %arg18[%c0_178, %c0_179, %c0_180], %425 {strides = array<i32>} : memref<1x16x128xf32, #tpu.memory_space<vmem>>, vector<1x16x128xf32>,
    return
  }
  func.func @transform_0(%arg0: i32) -> (i32, i32, i32) {
    %c0_i32 = arith.constant 0 : i32
    %c0_i32_0 = arith.constant 0 : i32
    %c0_i32_1 = arith.constant 0 : i32
    return %arg0, %c0_i32, %c0_i32_0 : i32, i32, i32
  }
  func.func @transform_1(%arg0: i32) -> (i32, i32, i32) {
    %c0_i32 = arith.constant 0 : i32
    %c0_i32_0 = arith.constant 0 : i32
    %c0_i32_1 = arith.constant 0 : i32
    %c0_i32_2 = arith.constant 0 : i32
    return %c0_i32, %c0_i32_0, %c0_i32_1 : i32, i32, i32
  }
  func.func @transform_2(%arg0: i32) -> (i32, i32, i32) {
    %c0_i32 = arith.constant 0 : i32
    %c0_i32_0 = arith.constant 0 : i32
    %c0_i32_1 = arith.constant 0 : i32
    %c0_i32_2 = arith.constant 0 : i32
    return %c0_i32, %c0_i32_0, %c0_i32_1 : i32, i32, i32
  }
  func.func @transform_3(%arg0: i32) -> (i32, i32, i32) {
    %c0_i32 = arith.constant 0 : i32
    %c0_i32_0 = arith.constant 0 : i32
    %c0_i32_1 = arith.constant 0 : i32
    %c0_i32_2 = arith.constant 0 : i32
    return %c0_i32, %c0_i32_0, %c0_i32_1 : i32, i32, i32
  }
  func.func @transform_4(%arg0: i32) -> (i32, i32, i32) {
    %c0_i32 = arith.constant 0 : i32
    %c0_i32_0 = arith.constant 0 : i32
    %c0_i32_1 = arith.constant 0 : i32
    %c0_i32_2 = arith.constant 0 : i32
    return %c0_i32, %c0_i32_0, %c0_i32_1 : i32, i32, i32
  }
  func.func @transform_5(%arg0: i32) -> (i32, i32, i32) {
    %c0_i32 = arith.constant 0 : i32
    %c0_i32_0 = arith.constant 0 : i32
    %c0_i32_1 = arith.constant 0 : i32
    %c0_i32_2 = arith.constant 0 : i32
    return %c0_i32, %c0_i32_0, %c0_i32_1 : i32, i32, i32
  }
  func.func @transform_6(%arg0: i32) -> (i32, i32, i32) {
    %c0_i32 = arith.constant 0 : i32
    %c0_i32_0 = arith.constant 0 : i32
    %c0_i32_1 = arith.constant 0 : i32
    %c0_i32_2 = arith.constant 0 : i32
    return %c0_i32, %c0_i32_0, %c0_i32_1 : i32, i32, i32
  }
  func.func @transform_7(%arg0: i32) -> (i32, i32, i32) {
    %c0_i32 = arith.constant 0 : i32
    %c0_i32_0 = arith.constant 0 : i32
    %c0_i32_1 = arith.constant 0 : i32
    %c0_i32_2 = arith.constant 0 : i32
    return %c0_i32, %c0_i32_0, %c0_i32_1 : i32, i32, i32
  }
  func.func @transform_8(%arg0: i32) -> (i32, i32, i32) {
    %c0_i32 = arith.constant 0 : i32
    %c0_i32_0 = arith.constant 0 : i32
    %c0_i32_1 = arith.constant 0 : i32
    %c0_i32_2 = arith.constant 0 : i32
    return %c0_i32, %c0_i32_0, %c0_i32_1 : i32, i32, i32
  }
  func.func @transform_9(%arg0: i32) -> (i32, i32, i32) {
    %c0_i32 = arith.constant 0 : i32
    %c0_i32_0 = arith.constant 0 : i32
    %c0_i32_1 = arith.constant 0 : i32
    %c0_i32_2 = arith.constant 0 : i32
    return %c0_i32, %c0_i32_0, %c0_i32_1 : i32, i32, i32
  }
  func.func @transform_10(%arg0: i32) -> (i32, i32, i32) {
    %c0_i32 = arith.constant 0 : i32
    %c0_i32_0 = arith.constant 0 : i32
    %c0_i32_1 = arith.constant 0 : i32
    %c0_i32_2 = arith.constant 0 : i32
    return %c0_i32, %c0_i32_0, %c0_i32_1 : i32, i32, i32
  }
  func.func @transform_11(%arg0: i32) -> (i32, i32, i32) {
    %c0_i32 = arith.constant 0 : i32
    %c0_i32_0 = arith.constant 0 : i32
    %c0_i32_1 = arith.constant 0 : i32
    %c0_i32_2 = arith.constant 0 : i32
    return %c0_i32, %c0_i32_0, %c0_i32_1 : i32, i32, i32
  }
  func.func @transform_12(%arg0: i32) -> (i32, i32, i32) {
    %c0_i32 = arith.constant 0 : i32
    %c0_i32_0 = arith.constant 0 : i32
    %c0_i32_1 = arith.constant 0 : i32
    %c0_i32_2 = arith.constant 0 : i32
    return %c0_i32, %c0_i32_0, %c0_i32_1 : i32, i32, i32
  }
  func.func @transform_13(%arg0: i32) -> (i32, i32) {
    %c0_i32 = arith.constant 0 : i32
    %c0_i32_0 = arith.constant 0 : i32
    %c0_i32_1 = arith.constant 0 : i32
    return %c0_i32, %c0_i32_0 : i32, i32
  }
  func.func @transform_14(%arg0: i32) -> (i32, i32) {
    %c0_i32 = arith.constant 0 : i32
    %c0_i32_0 = arith.constant 0 : i32
    %c0_i32_1 = arith.constant 0 : i32
    return %c0_i32, %c0_i32_0 : i32, i32
  }
  func.func @transform_15(%arg0: i32) -> (i32, i32) {
    %c0_i32 = arith.constant 0 : i32
    %c0_i32_0 = arith.constant 0 : i32
    %c0_i32_1 = arith.constant 0 : i32
    return %c0_i32, %c0_i32_0 : i32, i32
  }
  func.func @transform_16(%arg0: i32) -> (i32, i32) {
    %c0_i32 = arith.constant 0 : i32
    %c0_i32_0 = arith.constant 0 : i32
    %c0_i32_1 = arith.constant 0 : i32
    return %c0_i32, %c0_i32_0 : i32, i32
  }
  func.func @transform_17(%arg0: i32) -> (i32, i32, i32) {
    %c0_i32 = arith.constant 0 : i32
    %c0_i32_0 = arith.constant 0 : i32
    %c0_i32_1 = arith.constant 0 : i32
    return %arg0, %c0_i32, %c0_i32_0 : i32, i32, i32
  }
}

</mosaic_0001>

<bundles_post_ra>
// kernel: decoder_forward.1
= control target key start
LH: loop header
LB: loop body
LE: loop exit
PB: predicated region body
PF: predicated region fallthrough
CT: control target
= control target key end

     0   :  { %s4867_s24 = smov 0   ;;  %s5531_s0 = inlined_call_operand.vmem [shape: f32[2,16,64], index: 0, kind: input, shape index: {}]   ;;  %s5532_s1 = inlined_call_operand.vmem [shape: f32[2,1,64], index: 1, kind: input, shape index: {}]   ;;  %s5533_s2 = inlined_call_operand.vmem [shape: f32[2,1,64], index: 2, kind: input, shape index: {}]   ;;  %s5534_s3 = inlined_call_operand.vmem [shape: bf16[2,64,192], index: 3, kind: input, shape index: {}]   ;;  %s5535_s4 = inlined_call_operand.vmem [shape: f32[2,1,192], index: 4, kind: input, shape index: {}]   ;;  %s5536_s5 = inlined_call_operand.vmem [shape: bf16[2,64,64], index: 5, kind: input, shape index: {}]   ;;  %s5537_s6 = inlined_call_operand.vmem [shape: f32[2,1,64], index: 6, kind: input, shape index: {}]   ;;  %s5538_s7 = inlined_call_operand.vmem [shape: f32[2,1,64], index: 7, kind: input, shape index: {}]   ;;  %s5539_s8 = inlined_call_operand.vmem [shape: f32[2,1,64], index: 8, kind: input, shape index: {}]   ;;  %s5540_s9 = inlined_call_operand.vmem [shape: bf16[2,64,256], index: 9, kind: input, shape index: {}]   ;;  %s5541_s10 = inlined_call_operand.vmem [shape: f32[2,1,256], index: 10, kind: input, shape index: {}]   ;;  %s5542_s11 = inlined_call_operand.vmem [shape: bf16[2,256,64], index: 11, kind: input, shape index: {}]   ;;  %s5543_s12 = inlined_call_operand.vmem [shape: f32[2,1,64], index: 12, kind: input, shape index: {}]   ;;  %s5544_s13 = inlined_call_operand.vmem [shape: f32[1,64], index: 13, kind: input, shape index: {}]   ;;  %s5545_s14 = inlined_call_operand.vmem [shape: f32[1,64], index: 14, kind: input, shape index: {}]   ;;  %s5546_s15 = inlined_call_operand.vmem [shape: bf16[64,128], index: 15, kind: input, shape index: {}]   ;;  %s5547_s16 = inlined_call_operand.vmem [shape: f32[1,128], index: 16, kind: input, shape index: {}]   ;;  %s5548_s17 = inlined_call_operand.vmem [shape: f32[2,16,128], index: 17, kind: output, shape index: {}]  }
   0x1   :  { %5558 = sst [smem:[#allocation2_spill]] %s5531_s0 }
   0x2   :  { %5559 = sst [smem:[#allocation3_spill]] %s5532_s1 }
   0x3 LB: > { %s3869_s25 = sadd.s32 4294967295, %s4765_s24   ;;  %p3873_p0 = scmp.ge.s32.totalorder %s4765_s24, 1  ;;  %s4765_s24 = sphi %s4867_s24, %s27_s24  }
   0x4   : > { %p487_p1 = scmp.lt.s32.totalorder %s4765_s24, 3 }
   0x6   : > { %p488_p2 = pnand %p3873_p0, %p487_p1 }
   0x7   : > { %p539_p3 = scmp.lt.s32.totalorder (!%p488_p2), %s3869_s25, 1  ;;  %vm561_vm0 = vcmask (!%p488_p2), 523264   ;;  %s5560_s29 = sld [smem:[#allocation2_spill]] (!%p488_p2)  ;;  %v4567_v14 = vld [vmem:[%s5534_s3 + $0x4] ss:$8 sps:$4 sm:$0xff] (!%p488_p2)   ;;  %v4767_v22 = vmov (!%p488_p2), 0   ;;  %v552_v40 = vlaneseq (!%p488_p2) }
   0x8   : > { %491 = sbr.rel (%p488_p2) target bundleno = 8539 (0x215b), region = 88  ;;  %v4569_v15 = vld [vmem:[%s5534_s3] ss:$8 sps:$4 sm:$0xff] (!%p488_p2)   ;;  %669 = vmatprep.subr.bf16.mxu0 (!%p488_p2), %v4567_v14  ;;  %v4570_v16 = vld [vmem:[%s5534_s3 + $0x14] ss:$8 sps:$4 sm:$0xff] (!%p488_p2)   ;;  %701 = vmatprep.mubr.bf16.mxu0 (!%p488_p2), %v4767_v22  ;;  %s5561_s22 = sld [smem:[#allocation3_spill]] (!%p488_p2) }
   0x9   : > { %670 = vmatpush1.bf16.msra.mxu0 (!%p488_p2), %v4569_v15  ;;  %v4572_v17 = vld [vmem:[%s5534_s3 + $0x10] ss:$8 sps:$4 sm:$0xff] (!%p488_p2)   ;;  %v4573_v18 = vld [vmem:[%s5534_s3 + $0x24] ss:$8 sps:$4 sm:$0xff] (!%p488_p2)   ;;  %v4575_v19 = vld [vmem:[%s5534_s3 + $0x20] ss:$8 sps:$4 sm:$0xff] (!%p488_p2)  }
   0xa   : > { %671 = vmatprep.subr.bf16.mxu0 (!%p488_p2), %v4570_v16  ;;  %v4576_v20 = vld [vmem:[%s5534_s3 + $0x34] ss:$8 sps:$4 sm:$0xff] (!%p488_p2)   ;;  %v4578_v21 = vld [vmem:[%s5534_s3 + $0x30] ss:$8 sps:$4 sm:$0xff] (!%p488_p2)   ;;  %v3879_v35 = vld [vmem:[%s5533_s2] ss:$0 sm:$0xff] (!%p488_p2) }
   0xb   : > { %v553_v41 = vshrl.u32 (!%p488_p2), %v552_v40, 7  ;;  %v614_v43 = vld [vmem:[%s5535_s4] sm:$0x3] (!%p488_p2)  ;;  %vm726_vm1 = vcmask (!%p488_p2), 130048   ;;  %s4769_s30 = smov (!%p488_p2), 112   ;;  %v556_v63 = vand.u32 (!%p488_p2), 127, %v552_v40 }
   0xc   : > { %vm4956_vm2 = vmpackc.low (!%p488_p2), %vm726_vm1, %vm726_vm1  ;;  %s5557_s18 = smov (!%p488_p2), 48   ;;  %s5554_s19 = smov (!%p488_p2), 32   ;;  %vm4774_vm5 = vmmov (!%p488_p2), 0  }
   0xd   : > { %672 = vmatpush1.bf16.msra.mxu0 (!%p488_p2), %v4572_v17  ;;  %v4927_v42 = vsub.s32 (!%p488_p2), 0, %v553_v41  ;;  %v4932_v44 = vsub.s32 (!%p488_p2), 1, %v553_v41  ;;  %vm4966_vm3 = vcmp.le.s32.totalorder (!%p488_p2), %v556_v63, %v553_v41  ;;  %s5555_s21 = smov (!%p488_p2), 96   ;;  %s5551_s28 = smov (!%p488_p2), 16  }
   0xe   : > { %673 = vmatprep.subr.bf16.mxu0 (!%p488_p2), %v4573_v18  ;;  %v3878_v31 = vld [vmem:[%s5561_s22] ss:$0 sm:$0xff] (!%p488_p2)  ;;  %s5571_s20 = smov (!%p488_p2), 80  }
   0xf   : > { %s5575_s25 = smov (!%p539_p3, %s3869_s25), 1  ;;  %v619_v45 = vrot.slane %v614_v43, %v4927_v42  ;;  %v623_v47 = vrot.slane %v614_v43, %v4932_v44 }
  0x10   : > { %s5550_s26 = sshll.u32 %s5575_s25, 4 }
  0x11   : > { %s543_s0 = scalar_lea.vmem %s5560_s29, %s5550_s26  ;;  %674 = vmatpush1.bf16.msra.mxu0 %v4575_v19  ;;  %s5552_s29 = smov 80  }
  0x12   : > { %v4883_v0 = vld [vmem:[%s543_s0] sm:$0xff]  ;;  %v4885_v1 = vld [vmem:[%s543_s0 + $0x8] sm:$0xff]  ;;  %675 = vmatprep.subr.bf16.mxu0 %v4576_v20  ;;  %s4768_s0 = smov 64   ;;  %s5572_s26 = smov 16  }
  0x13   : > { %v562_v2 = vsel %vm561_vm0, %v4883_v0, 0.0  ;;  %v565_v3 = vsel %vm561_vm0, %v4885_v1, 0.0 }
  0x14   : > { %563 = vadd.xlane.f32.xlu0 %v562_v2  ;;  %v554_v2 = vadd.s32 8, %v553_v41 }
  0x15   : > { %676 = vmatpush1.bf16.msra.mxu0 %v4578_v21 }
  0x16   : > { %vm4970_vm4 = vcmp.le.s32.totalorder %v556_v63, %v554_v2 }
  0x18   : > { %566 = vadd.xlane.f32.xlu0 %v565_v3 }
  0xa1   : > { %v564_v4 = vpop.xlane.xlu0 %563 }
  0xa2   : > { %v569_v5 = vmul.f32 0.015625, %v564_v4 }
  0xa4   : > { %v571_v6 = vsub.f32 %v4883_v0, %v569_v5 }
  0xa5   : > { %v567_v7 = vpop.xlane.xlu0 %566 }
  0xa6   : > { %v570_v8 = vmul.f32 0.015625, %v567_v7  ;;  %v573_v9 = vmul.f32 %v571_v6, %v571_v6 }
  0xa8   : > { %v572_v10 = vsub.f32 %v4885_v1, %v570_v8  ;;  %v575_v11 = vsel %vm561_vm0, %v573_v9, 0.0 }
  0xa9   : > { %576 = vadd.xlane.f32.xlu1 %v575_v11 }
  0xaa   : > { %v574_v12 = vmul.f32 %v572_v10, %v572_v10 }
  0xac   : > { %v578_v13 = vsel %vm561_vm0, %v574_v12, 0.0 }
  0xad   : > { %579 = vadd.xlane.f32.xlu1 %v578_v13 }
 0x136   : > { %v577_v23 = vpop.xlane.xlu1 %576 }
 0x137   : > { %v581_v24 = vmul.f32 0.015625, %v577_v23 }
 0x139   : > { %v583_v25 = vadd.f32 1e-05, %v581_v24 }
 0x13a   : > { %v580_v26 = vpop.xlane.xlu1 %579 }
 0x13b   : > { %4659 = vrsqrt.f32 %v583_v25  ;;  %v582_v27 = vmul.f32 0.015625, %v580_v26 }
 0x13d   : > { %v584_v28 = vadd.f32 1e-05, %v582_v27 }
 0x13f   : > { %4661 = vrsqrt.f32 %v584_v28 }
 0x145   : > { %v4660_v29 = vpop.eup %4659 }
 0x146   : > { %v587_v30 = vmul.f32 %v4660_v29, %v571_v6 }
 0x148   : > { %v595_v34 = vmul.f32 %v3878_v31, %v587_v30 }
 0x149   : > { %v4662_v32 = vpop.eup %4661 }
 0x14a   : > { %v588_v33 = vmul.f32 %v4662_v32, %v572_v10  ;;  %v603_v37 = vadd.f32 %v3879_v35, %v595_v34 }
 0x14c   : > { %v596_v36 = vmul.f32 %v3878_v31, %v588_v33 }
 0x14e   : > { %v604_v38 = vadd.f32 %v3879_v35, %v596_v36 }
 0x150   : > { %v613_v39 = vpack.c.bf16 %v604_v38, %v603_v37 }
 0x152   : > { %3888 = vmatmul.mubr.msk.bf16.vlgmr.msra.gmra.mrb[0].mxu0 %vm561_vm0, %v613_v39 }
 0x225   : > { %v703_v46 = vpop.f32.mrb[0].mxu0 }
 0x226   : > { %v4936_v48 = vadd.f32 %v703_v46, %v619_v45  ;;  %v705_v49 = vpop.f32.mrb[1].mxu0 }
 0x227   : > { %v707_v50 = vpop.f32.mrb[2].mxu0  ;;  %v706_v53 = vadd.f32 %v705_v49, %v623_v47 }
 0x228   : > { %v4938_v51 = vadd.f32 %v707_v50, %v619_v45  ;;  %v709_v52 = vpop.f32.mrb[3].mxu0  ;;  %4231 = vmatprep.mubr.msk.f32.mxu1 %vm726_vm1, %v4936_v48  ;;  %v4579_v50 = vld [vmem:[%s5536_s5 + $0x8] sm:$0xff]  }
 0x229   : > { %v710_v54 = vadd.f32 %v709_v52, %v623_v47  ;;  %v4772_v52 = vmov 0.0  }
 0x22a   : > { %v4944_v55 = vpack.i.bf16 %v4938_v51, %v4936_v48 }
 0x22b   : > { %v4405_v56 = vpack.c.bf16 %v710_v54, %v706_v53  ;;  %v4946_v57 = vpack.i.bf16 %v710_v54, %v706_v53 }
 0x22c   : > { %4498 = vrot.lane.b32.xlu0 %v4944_v55, %s4768_s0 }
 0x230   : > { %918 = vrot.lane.b32.xlu0 %v4936_v48, %s4769_s30 }
 0x234   : > { %920 = vrot.lane.b32.xlu0 %v4938_v51, %s4769_s30 }
 0x29e   : > { %v4499_v58 = vpop.permute.xlu0 %4498 }
 0x29f   : > { %v4501_v59 = vunpack.i.h.bf16 %v4499_v58  ;;  %v4500_v60 = vunpack.i.l.bf16 %v4499_v58 }
 0x2a1   : > { %v4399_v62 = vpack.c.bf16 %v4501_v59, %v4500_v60 }
 0x2a2   : > { %v919_v34 = vpop.permute.xlu0 %918 }
 0x2a3   : > { %4401 = vmatprep.subr.msk.bf16.mxu1 %vm4956_vm2, %v4399_v62 }
 0x2a4   : > { %4404 = vmatpush3.bf16.xpose.msk.msra.mxu1 %vm4956_vm2, %v4399_v62 }
 0x2a5   : > { %4406 = vmatprep.subr.bf16.mxu1 %v4405_v56 }
 0x2a6   : > { %v921_v35 = vpop.permute.xlu0 %920 }
 0x2ab   : > { %4232 = vmatmul.mubr.msk.f32.vlgmr.msra.gmra.mrb[0].mxu1 %vm726_vm1, %v4938_v51 }
 0x2ac   : > { %4408 = vmatpush3.bf16.msra.mxu1 %v4405_v56 }
 0x37e   : > { %v4233_v3 = vpop.f32.mrb[0].mxu1 }
 0x37f   : > { %v801_v4 = vpop.f32.mrb[1].mxu1  ;;  %v811_v6 = vmul.f32 0.25, %v4233_v3 }
 0x380   : > { %v810_v7 = vmul.f32 0.25, %v801_v4 }
 0x381   : > { %v813_v11 = vsel %vm4970_vm4, %v811_v6, -1e+30 }
 0x382   : > { %v812_v9 = vsel %vm4966_vm3, %v810_v7, -1e+30  ;;  %v817_v12 = vsel %vm726_vm1, %v813_v11, -inf }
 0x383   : > { %v814_v10 = vsel %vm726_vm1, %v812_v9, -inf }
 0x384   : > { %815 = vmax.xlane.f32.xlu1 %v814_v10 }
 0x388   : > { %818 = vmax.xlane.f32.xlu1 %v817_v12 }
 0x411   : > { %v816_v13 = vpop.xlane.xlu1 %815 }
 0x412   : > { %v820_v14 = vsub.f32 %v812_v9, %v816_v13 }
 0x414   : > { %v822_v17 = vmul.f32 1.442695, %v820_v14 }
 0x415   : > { %v819_v15 = vpop.xlane.xlu1 %818 }
 0x416   : > { %v821_v16 = vsub.f32 %v813_v11, %v819_v15 }
 0x418   : > { %v824_v18 = vmul.f32 1.442695, %v821_v16 }
 0x41a   : > { %4663 = vpow2.f32 %v824_v18 }
 0x41b   : > { %4665 = vpow2.f32 %v822_v17 }
 0x424   : > { %v4664_v19 = vpop.eup %4663 }
 0x425   : > { %v829_v20 = vsel %vm726_vm1, %v4664_v19, 0.0  ;;  %v4666_v21 = vpop.eup %4665 }
 0x426   : > { %830 = vadd.xlane.f32.xlu1 %v829_v20  ;;  %v826_v23 = vsel %vm726_vm1, %v4666_v21, 0.0 }
 0x42a   : > { %827 = vadd.xlane.f32.xlu1 %v826_v23 }
 0x43b   : > { %4503 = vrot.lane.b32.xlu1 %v4944_v55, %s5557_s18 }
 0x4b3   : > { %v831_v24 = vpop.xlane.xlu1 %830 }
 0x4b4   : > { %4667 = vrcp.f32 %v831_v24 }
 0x4b7   : > { %v828_v25 = vpop.xlane.xlu1 %827 }
 0x4b8   : > { %4669 = vrcp.f32 %v828_v25 }
 0x4bb   : > { %v4504_v26 = vpop.permute.xlu1 %4503 }
 0x4bc   : > { %v4506_v27 = vunpack.i.h.bf16 %v4504_v26  ;;  %v4505_v28 = vunpack.i.l.bf16 %v4504_v26 }
 0x4be   : > { %v4409_v29 = vpack.c.bf16 %v4506_v27, %v4505_v28  ;;  %v4668_v30 = vpop.eup %4667 }
 0x4bf   : > { %v835_v33 = vmul.f32 %v4668_v30, %v4664_v19  ;;  %v4580_v19 = vld [vmem:[%s5536_s5] sm:$0xff]  }
 0x4c0   : > { %4411 = vmatprep.subr.msk.bf16.mxu1 %vm4956_vm2, %v4409_v29 }
 0x4c2   : > { %v4670_v31 = vpop.eup %4669 }
 0x4c3   : > { %v834_v32 = vmul.f32 %v4670_v31, %v4666_v21 }
 0x4c5   : > { %4238 = vmatprep.mubr.msk.f32.mxu1 %vm726_vm1, %v834_v32 }
 0x4c6   : > { %4239 = vmatmul.mubr.msk.f32.vlgmr.msra.gmra.mrb[2].mxu1 %vm726_vm1, %v835_v33 }
 0x4c7   : > { %4414 = vmatpush3.bf16.xpose.msk.msra.mxu1 %vm4956_vm2, %v4409_v29  ;;  %4245 = vmatprep.mubr.msk.f32.mxu1 %vm726_vm1, %v919_v34 }
 0x4c8   : > { %4255 = vmatprep.subr.bf16.mxu1 %v4772_v52 }
 0x4ce   : > { %4246 = vmatmul.mubr.msk.f32.vlgmr.msra.gmra.mrb[4].mxu1 %vm726_vm1, %v921_v35 }
 0x4cf   : > { %4256 = vmatpush3.bf16.msra.mxu1 %v4579_v50  ;;  %4257 = vmatprep.mubr.msk.bf16.mxu1 %vm4774_vm5, %v4772_v52 }
 0x599   : > { %v4992_v36 = vpop.f32.mrb[2].mxu1 }
 0x59a   : > { %v4994_v37 = vpop.f32.mrb[3].mxu1 }
 0x59b   : > { %v917_v38 = vpack.c.bf16 %v4992_v36, %v4994_v37 }
 0x5a1   : > { %v4247_v39 = vpop.f32.mrb[4].mxu1 }
 0x5a2   : > { %v1010_v40 = vmul.f32 0.25, %v4247_v39  ;;  %v1000_v41 = vpop.f32.mrb[5].mxu1 }
 0x5a3   : > { %v1009_v43 = vmul.f32 0.25, %v1000_v41 }
 0x5a4   : > { %v1012_v45 = vsel %vm4970_vm4, %v1010_v40, -1e+30 }
 0x5a5   : > { %v1016_v46 = vsel %vm726_vm1, %v1012_v45, -inf  ;;  %v1011_v47 = vsel %vm4966_vm3, %v1009_v43, -1e+30 }
 0x5a6   : > { %1017 = vmax.xlane.f32.xlu1 %v1016_v46  ;;  %v1013_v49 = vsel %vm726_vm1, %v1011_v47, -inf }
 0x5a7   : > { %1014 = vmax.xlane.f32.xlu0 %v1013_v49 }
 0x5b7   : > { %4513 = vrot.lane.b32.xlu1 %v4944_v55, %s5554_s19 }
 0x5bb   : > { %1225 = vrot.lane.b32.xlu1 %v4936_v48, %s5555_s21 }
 0x5bf   : > { %1227 = vrot.lane.b32.xlu1 %v4938_v51, %s5555_s21 }
 0x633   : > { %v1018_v53 = vpop.xlane.xlu1 %1017 }
 0x634   : > { %v1020_v54 = vsub.f32 %v1012_v45, %v1018_v53  ;;  %v1015_v56 = vpop.xlane.xlu0 %1014 }
 0x635   : > { %v1019_v58 = vsub.f32 %v1011_v47, %v1015_v56 }
 0x636   : > { %v1023_v59 = vmul.f32 1.442695, %v1020_v54 }
 0x637   : > { %v1021_v60 = vmul.f32 1.442695, %v1019_v58  ;;  %v4514_v62 = vpop.permute.xlu1 %4513 }
 0x638   : > { %4671 = vpow2.f32 %v1023_v59  ;;  %v4516_v63 = vunpack.i.h.bf16 %v4514_v62  ;;  %v4515_v2 = vunpack.i.l.bf16 %v4514_v62 }
 0x639   : > { %4673 = vpow2.f32 %v1021_v60 }
 0x63a   : > { %v4419_v3 = vpack.c.bf16 %v4516_v63, %v4515_v2 }
 0x63b   : > { %v1226_v25 = vpop.permute.xlu1 %1225 }
 0x63c   : > { %4421 = vmatprep.subr.msk.bf16.mxu1 %vm4956_vm2, %v4419_v3 }
 0x63f   : > { %v1228_v30 = vpop.permute.xlu1 %1227 }
 0x642   : > { %v4672_v4 = vpop.eup %4671 }
 0x643   : > { %v1028_v6 = vsel %vm726_vm1, %v4672_v4, 0.0  ;;  %v4674_v7 = vpop.eup %4673 }
 0x644   : > { %1029 = vadd.xlane.f32.xlu0 %v1028_v6  ;;  %v1025_v9 = vsel %vm726_vm1, %v4674_v7, 0.0 }
 0x648   : > { %1026 = vadd.xlane.f32.xlu0 %v1025_v9 }
 0x65e   : > { %4508 = vrot.lane.b32.xlu0 %v4946_v57, %s4769_s30 }
 0x6d1   : > { %v1030_v10 = vpop.xlane.xlu0 %1029 }
 0x6d2   : > { %4675 = vrcp.f32 %v1030_v10 }
 0x6d5   : > { %v1027_v11 = vpop.xlane.xlu0 %1026 }
 0x6d6   : > { %4677 = vrcp.f32 %v1027_v11 }
 0x6d9   : > { %v4509_v12 = vpop.permute.xlu0 %4508 }
 0x6da   : > { %v4511_v13 = vunpack.i.h.bf16 %v4509_v12  ;;  %v4510_v14 = vunpack.i.l.bf16 %v4509_v12 }
 0x6dc   : > { %v4415_v15 = vpack.c.bf16 %v4511_v13, %v4510_v14  ;;  %v4676_v16 = vpop.eup %4675 }
 0x6dd   : > { %v1034_v20 = vmul.f32 %v4676_v16, %v4672_v4  ;;  %v4581_v16 = vld [vmem:[%s5536_s5 + $0x10] sm:$0xff]  }
 0x6de   : > { %4416 = vmatprep.subr.bf16.mxu0 %v4415_v15 }
 0x6df   : > { %4418 = vmatpush3.bf16.msra.mxu0 %v4415_v15 }
 0x6e0   : > { %v4678_v17 = vpop.eup %4677  ;;  %4261 = vmatprep.subr.bf16.mxu0 %v4772_v52 }
 0x6e1   : > { %v1033_v18 = vmul.f32 %v4678_v17, %v4674_v7 }
 0x6e3   : > { %4252 = vmatprep.mubr.msk.f32.mxu0 %vm726_vm1, %v1033_v18 }
 0x6e4   : > { %4253 = vmatmul.mubr.msk.f32.vlgmr.msra.gmra.mrb[4].mxu0 %vm726_vm1, %v1034_v20 }
 0x6e5   : > { %4262 = vmatpush3.bf16.msra.mxu0 %v4580_v19  ;;  %4263 = vmatprep.mubr.msk.bf16.mxu0 %vm4774_vm5, %v4772_v52 }
 0x6e8   : > { %4264 = vmatmul.mubr.msk.bf16.vlgmr.msra.gmra.mrb[8].mxu0 %vm726_vm1, %v917_v38 }
 0x7b7   : > { %v4254_v21 = vpop.f32.mrb[4].mxu0 }
 0x7b8   : > { %v1115_v23 = vpop.f32.mrb[5].mxu0 }
 0x7b9   : > { %v1124_v24 = vpack.c.bf16 %v4254_v21, %v1115_v23 }
 0x7bb   : > { %4258 = vmatmul.mubr.msk.bf16.vlgmr.msra.gmra.mrb[8].mxu1 %vm726_vm1, %v1124_v24  ;;  %v1218_v26 = vpop.f32.mrb[8].mxu0 }
 0x7bc   : > { %4424 = vmatpush3.bf16.xpose.msk.msra.mxu1 %vm4956_vm2, %v4419_v3  ;;  %v4265_v27 = vpop.f32.mrb[9].mxu0  ;;  %4271 = vmatprep.mubr.msk.f32.mxu1 %vm726_vm1, %v1226_v25 }
 0x7bd   : > { %v1221_v28 = vpop.f32.mrb[10].mxu0  ;;  %4281 = vmatprep.subr.bf16.mxu1 %v4772_v52 }
 0x7be   : > { %v4266_v29 = vpop.f32.mrb[11].mxu0 }
 0x7c3   : > { %4272 = vmatmul.mubr.msk.f32.vlgmr.msra.gmra.mrb[6].mxu1 %vm726_vm1, %v1228_v30 }
 0x7c4   : > { %4283 = vmatprep.mubr.msk.bf16.mxu1 %vm4774_vm5, %v4772_v52  ;;  %4282 = vmatpush3.bf16.msra.mxu1 %v4581_v16 }
 0x88e   : > { %v1168_v31 = vpop.f32.mrb[8].mxu1 }
 0x88f   : > { %v5039_v32 = vadd.f32 %v1218_v26, %v1168_v31  ;;  %v4259_v33 = vpop.f32.mrb[9].mxu1 }
 0x890   : > { %v1171_v34 = vpop.f32.mrb[10].mxu1 }
 0x891   : > { %v5041_v35 = vadd.f32 %v1221_v28, %v1171_v34  ;;  %v4260_v36 = vpop.f32.mrb[11].mxu1 }
 0x896   : > { %v4273_v37 = vpop.f32.mrb[6].mxu1 }
 0x897   : > { %v1317_v38 = vmul.f32 0.25, %v4273_v37  ;;  %v1307_v39 = vpop.f32.mrb[7].mxu1 }
 0x898   : > { %v1316_v40 = vmul.f32 0.25, %v1307_v39 }
 0x899   : > { %v1319_v41 = vsel %vm4970_vm4, %v1317_v38, -1e+30 }
 0x89a   : > { %v1323_v43 = vsel %vm726_vm1, %v1319_v41, -inf  ;;  %v1318_v45 = vsel %vm4966_vm3, %v1316_v40, -1e+30 }
 0x89b   : > { %1324 = vmax.xlane.f32.xlu1 %v1323_v43  ;;  %v1320_v46 = vsel %vm726_vm1, %v1318_v45, -inf }
 0x89c   : > { %1321 = vmax.xlane.f32.xlu0 %v1320_v46 }
 0x8ac   : > { %4523 = vrot.lane.b32.xlu1 %v4944_v55, %s5551_s28 }
 0x8b0   : > { %1482 = vrot.lane.b32.xlu1 %v4936_v48, %s5552_s29 }
 0x8b4   : > { %1484 = vrot.lane.b32.xlu1 %v4938_v51, %s5552_s29 }
 0x928   : > { %v1325_v47 = vpop.xlane.xlu1 %1324 }
 0x929   : > { %v1327_v49 = vsub.f32 %v1319_v41, %v1325_v47  ;;  %v1322_v50 = vpop.xlane.xlu0 %1321 }
 0x92a   : > { %v1326_v53 = vsub.f32 %v1318_v45, %v1322_v50 }
 0x92b   : > { %v1330_v54 = vmul.f32 1.442695, %v1327_v49 }
 0x92c   : > { %v1328_v56 = vmul.f32 1.442695, %v1326_v53  ;;  %v4524_v62 = vpop.permute.xlu1 %4523 }
 0x92d   : > { %4679 = vpow2.f32 %v1330_v54  ;;  %v4526_v2 = vunpack.i.h.bf16 %v4524_v62  ;;  %v4525_v3 = vunpack.i.l.bf16 %v4524_v62 }
 0x92e   : > { %4681 = vpow2.f32 %v1328_v56 }
 0x92f   : > { %v4429_v9 = vpack.c.bf16 %v4526_v2, %v4525_v3 }
 0x930   : > { %v1483_v14 = vpop.permute.xlu1 %1482 }
 0x934   : > { %v1485_v15 = vpop.permute.xlu1 %1484 }
 0x937   : > { %v4680_v58 = vpop.eup %4679 }
 0x938   : > { %v1335_v59 = vsel %vm726_vm1, %v4680_v58, 0.0  ;;  %v4682_v60 = vpop.eup %4681 }
 0x939   : > { %1336 = vadd.xlane.f32.xlu0 %v1335_v59  ;;  %v1332_v55 = vsel %vm726_vm1, %v4682_v60, 0.0 }
 0x93d   : > { %1333 = vadd.xlane.f32.xlu0 %v1332_v55 }
 0x953   : > { %4518 = vrot.lane.b32.xlu0 %v4946_v57, %s5555_s21  ;;  %s5568_s21 = smov 48  }
 0x9c6   : > { %v1337_v48 = vpop.xlane.xlu0 %1336 }
 0x9c7   : > { %4683 = vrcp.f32 %v1337_v48 }
 0x9ca   : > { %v1334_v51 = vpop.xlane.xlu0 %1333 }
 0x9cb   : > { %4685 = vrcp.f32 %v1334_v51 }
 0x9ce   : > { %v4519_v63 = vpop.permute.xlu0 %4518 }
 0x9cf   : > { %v4521_v4 = vunpack.i.h.bf16 %v4519_v63  ;;  %v4520_v6 = vunpack.i.l.bf16 %v4519_v63 }
 0x9d1   : > { %v4425_v7 = vpack.c.bf16 %v4521_v4, %v4520_v6  ;;  %v4684_v10 = vpop.eup %4683  ;;  %v3921_v4 = vld [vmem:[%s5537_s6] ss:$0 sm:$0xff] }
 0x9d2   : > { %v1341_v13 = vmul.f32 %v4684_v10, %v4680_v58 }
 0x9d3   : > { %4426 = vmatprep.subr.bf16.mxu0 %v4425_v7 }
 0x9d4   : > { %4428 = vmatpush3.bf16.msra.mxu0 %v4425_v7 }
 0x9d5   : > { %v4686_v11 = vpop.eup %4685  ;;  %4431 = vmatprep.subr.msk.bf16.mxu0 %vm4956_vm2, %v4429_v9 }
 0x9d6   : > { %v1340_v12 = vmul.f32 %v4686_v11, %v4682_v60 }
 0x9d8   : > { %4278 = vmatprep.mubr.msk.f32.mxu0 %vm726_vm1, %v1340_v12 }
 0x9d9   : > { %4279 = vmatmul.mubr.msk.f32.vlgmr.msra.gmra.mrb[6].mxu0 %vm726_vm1, %v1341_v13 }
 0x9da   : > { %4291 = vmatprep.mubr.msk.f32.mxu0 %vm726_vm1, %v1483_v14 }
 0x9dd   : > { %4434 = vmatpush3.bf16.xpose.msk.msra.mxu0 %vm4956_vm2, %v4429_v9 }
 0x9de   : > { %4301 = vmatprep.subr.bf16.mxu0 %v4772_v52 }
 0x9e4   : > { %4292 = vmatmul.mubr.msk.f32.vlgmr.msra.gmra.mrb[12].mxu0 %vm726_vm1, %v1485_v15 }
 0x9e5   : > { %4303 = vmatprep.mubr.msk.bf16.mxu0 %vm4774_vm5, %v4772_v52 }
 0xaac   : > { %v4280_v17 = vpop.f32.mrb[6].mxu0 }
 0xaad   : > { %v1420_v18 = vpop.f32.mrb[7].mxu0 }
 0xaae   : > { %v1429_v19 = vpack.c.bf16 %v4280_v17, %v1420_v18 }
 0xab0   : > { %4284 = vmatmul.mubr.msk.bf16.vlgmr.msra.gmra.mrb[12].mxu1 %vm726_vm1, %v1429_v19 }
 0xab7   : > { %v4293_v20 = vpop.f32.mrb[12].mxu0 }
 0xab8   : > { %v1574_v21 = vmul.f32 0.25, %v4293_v20  ;;  %v1564_v23 = vpop.f32.mrb[13].mxu0 }
 0xab9   : > { %v1573_v24 = vmul.f32 0.25, %v1564_v23 }
 0xaba   : > { %v1576_v25 = vsel %vm4970_vm4, %v1574_v21, -1e+30 }
 0xabb   : > { %v1580_v26 = vsel %vm726_vm1, %v1576_v25, -inf  ;;  %v1575_v27 = vsel %vm4966_vm3, %v1573_v24, -1e+30 }
 0xabc   : > { %1581 = vmax.xlane.f32.xlu1 %v1580_v26  ;;  %v1577_v28 = vsel %vm726_vm1, %v1575_v27, -inf  ;;  %v4583_v26 = vld [vmem:[%s5540_s9] ss:$8 sps:$4 sm:$0xff]  }
 0xabd   : > { %1578 = vmax.xlane.f32.xlu0 %v1577_v28  ;;  %v4586_v28 = vld [vmem:[%s5540_s9 + $0x10] ss:$8 sps:$4 sm:$0xff]  }
 0xb49   : > { %v1582_v29 = vpop.xlane.xlu1 %1581 }
 0xb4a   : > { %v1584_v30 = vsub.f32 %v1576_v25, %v1582_v29  ;;  %v1579_v31 = vpop.xlane.xlu0 %1578  ;;  %v4585_v25 = vld [vmem:[%s5540_s9 + $0x4] ss:$8 sps:$4 sm:$0xff]  }
 0xb4b   : > { %v1583_v33 = vsub.f32 %v1575_v27, %v1579_v31  ;;  %v4588_v27 = vld [vmem:[%s5540_s9 + $0x14] ss:$8 sps:$4 sm:$0xff]   ;;  %v4591_v29 = vld [vmem:[%s5540_s9 + $0x24] ss:$8 sps:$4 sm:$0xff]   ;;  %v4592_v31 = vld [vmem:[%s5540_s9 + $0x30] ss:$8 sps:$4 sm:$0xff]  }
 0xb4c   : > { %v1587_v34 = vmul.f32 1.442695, %v1584_v30  ;;  %v4589_v30 = vld [vmem:[%s5540_s9 + $0x20] ss:$8 sps:$4 sm:$0xff]  }
 0xb4d   : > { %v1585_v36 = vmul.f32 1.442695, %v1583_v33  ;;  %v4594_v33 = vld [vmem:[%s5540_s9 + $0x34] ss:$8 sps:$4 sm:$0xff]  }
 0xb4e   : > { %4687 = vpow2.f32 %v1587_v34 }
 0xb4f   : > { %4689 = vpow2.f32 %v1585_v36 }
 0xb58   : > { %v4688_v37 = vpop.eup %4687 }
 0xb59   : > { %v1592_v38 = vsel %vm726_vm1, %v4688_v37, 0.0  ;;  %v4690_v39 = vpop.eup %4689 }
 0xb5a   : > { %1593 = vadd.xlane.f32.xlu0 %v1592_v38  ;;  %v1589_v40 = vsel %vm726_vm1, %v4690_v39, 0.0 }
 0xb5e   : > { %1590 = vadd.xlane.f32.xlu0 %v1589_v40 }
 0xb74   : > { %4528 = vrot.lane.b32.xlu0 %v4946_v57, %s5552_s29  ;;  %s5570_s29 = smov 32  }
 0xb83   : > { %v1473_v41 = vpop.f32.mrb[12].mxu1 }
 0xb84   : > { %v1480_v43 = vadd.f32 %v1473_v41, %v5039_v32  ;;  %v4285_v45 = vpop.f32.mrb[13].mxu1  ;;  %v4582_v32 = vld [vmem:[%s5536_s5 + $0x18] sm:$0xff]  }
 0xb85   : > { %v1476_v46 = vpop.f32.mrb[14].mxu1  ;;  %4302 = vmatpush3.bf16.msra.mxu0 %v4582_v32  ;;  %v3922_v45 = vld [vmem:[%s5538_s7] ss:$0 sm:$0xff]  ;;  %v4600_v32 = vld [vmem:[%s5542_s11 + $0x10] sm:$0xff]  }
 0xb86   : > { %v1481_v47 = vadd.f32 %v1476_v46, %v5041_v35  ;;  %v4286_v49 = vpop.f32.mrb[15].mxu1 }
 0xbe7   : > { %v1594_v50 = vpop.xlane.xlu0 %1593 }
 0xbe8   : > { %4691 = vrcp.f32 %v1594_v50  ;;  %v3923_v50 = vld [vmem:[%s5539_s8] ss:$0 sm:$0xff] }
 0xbeb   : > { %v1591_v53 = vpop.xlane.xlu0 %1590 }
 0xbec   : > { %4693 = vrcp.f32 %v1591_v53 }
 0xbef   : > { %v4529_v54 = vpop.permute.xlu0 %4528 }
 0xbf0   : > { %v4531_v56 = vunpack.i.h.bf16 %v4529_v54  ;;  %v4530_v58 = vunpack.i.l.bf16 %v4529_v54 }
 0xbf2   : > { %v4435_v59 = vpack.c.bf16 %v4531_v56, %v4530_v58  ;;  %v4692_v60 = vpop.eup %4691 }
 0xbf3   : > { %v1598_v48 = vmul.f32 %v4692_v60, %v4688_v37  ;;  %v4596_v60 = vld [vmem:[%s5542_s11] sm:$0xff]  }
 0xbf4   : > { %4436 = vmatprep.subr.bf16.mxu1 %v4435_v59 }
 0xbf5   : > { %4438 = vmatpush3.bf16.msra.mxu1 %v4435_v59  ;;  %v4595_v59 = vld [vmem:[%s5542_s11 + $0x40] sm:$0xff]  }
 0xbf6   : > { %v4694_v57 = vpop.eup %4693  ;;  %1858 = vmatprep.subr.bf16.mxu1 %v4585_v25  ;;  %4138 = vmatprep.subr.bf16.mxu0 %v4595_v59 }
 0xbf7   : > { %v1597_v55 = vmul.f32 %v4694_v57, %v4690_v39  ;;  %v4597_v57 = vld [vmem:[%s5542_s11 + $0x48] sm:$0xff]  }
 0xbf9   : > { %4298 = vmatprep.mubr.msk.f32.mxu1 %vm726_vm1, %v1597_v55  ;;  %v4598_v55 = vld [vmem:[%s5542_s11 + $0x8] sm:$0xff]  }
 0xbfa   : > { %4299 = vmatmul.mubr.msk.f32.vlgmr.msra.gmra.mrb[16].mxu1 %vm726_vm1, %v1598_v48  ;;  %v4599_v48 = vld [vmem:[%s5542_s11 + $0x50] sm:$0xff]  }
 0xbfb   : > { %1890 = vmatprep.mubr.bf16.mxu1 %v4767_v22  ;;  %1859 = vmatpush1.bf16.msra.mxu1 %v4583_v26 }
 0xbfc   : > { %1860 = vmatprep.subr.bf16.mxu1 %v4588_v27 }
 0xbff   : > { %1861 = vmatpush1.bf16.msra.mxu1 %v4586_v28 }
 0xc00   : > { %1862 = vmatprep.subr.bf16.mxu1 %v4591_v29 }
 0xc03   : > { %1863 = vmatpush1.bf16.msra.mxu1 %v4589_v30 }
 0xc04   : > { %1864 = vmatprep.subr.bf16.mxu1 %v4594_v33 }
 0xc07   : > { %1865 = vmatpush1.bf16.msra.mxu1 %v4592_v31 }
 0xccd   : > { %v4300_v35 = vpop.f32.mrb[16].mxu1 }
 0xcce   : > { %v1677_v51 = vpop.f32.mrb[17].mxu1 }
 0xccf   : > { %v1686_v62 = vpack.c.bf16 %v4300_v35, %v1677_v51  ;;  %v4601_v35 = vld [vmem:[%s5542_s11 + $0x58] sm:$0xff]  }
 0xcd0   : > { %v4602_v51 = vld [vmem:[%s5542_s11 + $0x18] sm:$0xff]  }
 0xcd1   : > { %4304 = vmatmul.mubr.msk.bf16.vlgmr.msra.gmra.mrb[16].mxu0 %vm726_vm1, %v1686_v62  ;;  %v4603_v62 = vld [vmem:[%s5542_s11 + $0x60] sm:$0xff]  }
 0xcd2   : > { %4139 = vmatpush3.bf16.msra.mxu0 %v4596_v60 }
 0xcd3   : > { %4140 = vmatprep.subr.bf16.mxu0 %v4597_v57 }
 0xcd6   : > { %4141 = vmatpush3.bf16.msra.mxu0 %v4598_v55 }
 0xcd7   : > { %4142 = vmatprep.subr.bf16.mxu0 %v4599_v48 }
 0xcda   : > { %4143 = vmatpush3.bf16.msra.mxu0 %v4600_v32 }
 0xcdb   : > { %4144 = vmatprep.subr.bf16.mxu0 %v4601_v35 }
 0xcde   : > { %4145 = vmatpush3.bf16.msra.mxu0 %v4602_v51 }
 0xcdf   : > { %4146 = vmatprep.subr.bf16.mxu0 %v4603_v62 }
 0xda4   : > { %v1730_v63 = vpop.f32.mrb[16].mxu0 }
 0xda5   : > { %v1737_v2 = vadd.f32 %v1730_v63, %v1480_v43  ;;  %v4305_v3 = vpop.f32.mrb[17].mxu0  ;;  %v4604_v63 = vld [vmem:[%s5542_s11 + $0x20] sm:$0xff]  }
 0xda6   : > { %v1733_v6 = vpop.f32.mrb[18].mxu0  ;;  %4147 = vmatpush3.bf16.msra.mxu0 %v4604_v63  ;;  %v4606_v3 = vld [vmem:[%s5542_s11 + $0x28] sm:$0xff]  }
 0xda7   : > { %v1739_v7 = vadd.f32 %v1737_v2, %v4883_v0  ;;  %v1738_v9 = vadd.f32 %v1733_v6, %v1481_v47  ;;  %v4306_v10 = vpop.f32.mrb[19].mxu0  ;;  %v4605_v2 = vld [vmem:[%s5542_s11 + $0x68] sm:$0xff]   ;;  %v4608_v6 = vld [vmem:[%s5542_s11 + $0x30] sm:$0xff]  }
 0xda8   : > { %4148 = vmatprep.subr.bf16.mxu0 %v4605_v2  ;;  %v1803_v10 = vld [vmem:[%s5541_s10] sm:$0x3] }
 0xda9   : > { %v5097_v11 = vadd.f32 %v3921_v4, %v1739_v7  ;;  %v1740_v12 = vadd.f32 %v1738_v9, %v4885_v1  ;;  %v4609_v7 = vld [vmem:[%s5542_s11 + $0x78] sm:$0xff]  }
 0xdaa   : > { %4149 = vmatpush3.bf16.msra.mxu0 %v4606_v3  ;;  %v4610_v9 = vld [vmem:[%s5542_s11 + $0x38] sm:$0xff]   ;;  %v3933_v3 = vld [vmem:[%s5543_s12] ss:$0 sm:$0xff] }
 0xdab   : > { %v5100_v13 = vadd.f32 %v3921_v4, %v1740_v12  ;;  %v1752_v14 = vsel %vm561_vm0, %v5097_v11, 0.0  ;;  %v4607_v4 = vld [vmem:[%s5542_s11 + $0x70] sm:$0xff]   ;;  %v1808_v12 = vrot.slane %v1803_v10, %v4927_v42 }
 0xdac   : > { %1753 = vadd.xlane.f32.xlu1 %v1752_v14  ;;  %4150 = vmatprep.subr.bf16.mxu0 %v4607_v4  ;;  %v1812_v14 = vrot.slane %v1803_v10, %v4932_v44 }
 0xdad   : > { %v1755_v15 = vsel %vm561_vm0, %v5100_v13, 0.0 }
 0xdae   : > { %4151 = vmatpush3.bf16.msra.mxu0 %v4608_v6 }
 0xdaf   : > { %4152 = vmatprep.subr.bf16.mxu0 %v4609_v7 }
 0xdb0   : > { %1756 = vadd.xlane.f32.xlu1 %v1755_v15 }
 0xdb2   : > { %4153 = vmatpush3.bf16.msra.mxu0 %v4610_v9 }
 0xe39   : > { %v1754_v16 = vpop.xlane.xlu1 %1753 }
 0xe3a   : > { %v1758_v17 = vmul.f32 0.015625, %v1754_v16 }
 0xe3c   : > { %v1760_v0 = vsub.f32 %v5097_v11, %v1758_v17 }
 0xe3d   : > { %v1757_v18 = vpop.xlane.xlu1 %1756 }
 0xe3e   : > { %v1759_v19 = vmul.f32 0.015625, %v1757_v18  ;;  %v1762_v20 = vmul.f32 %v1760_v0, %v1760_v0 }
 0xe40   : > { %v1761_v21 = vsub.f32 %v5100_v13, %v1759_v19  ;;  %v1764_v1 = vsel %vm561_vm0, %v1762_v20, 0.0 }
 0xe41   : > { %1765 = vadd.xlane.f32.xlu1 %v1764_v1 }
 0xe42   : > { %v1763_v23 = vmul.f32 %v1761_v21, %v1761_v21 }
 0xe44   : > { %v1767_v24 = vsel %vm561_vm0, %v1763_v23, 0.0 }
 0xe45   : > { %1768 = vadd.xlane.f32.xlu1 %v1767_v24 }
 0xece   : > { %v1766_v34 = vpop.xlane.xlu1 %1765 }
 0xecf   : > { %v1770_v36 = vmul.f32 0.015625, %v1766_v34 }
 0xed1   : > { %v1772_v37 = vadd.f32 1e-05, %v1770_v36 }
 0xed2   : > { %v1769_v38 = vpop.xlane.xlu1 %1768 }
 0xed3   : > { %4695 = vrsqrt.f32 %v1772_v37  ;;  %v1771_v39 = vmul.f32 0.015625, %v1769_v38 }
 0xed5   : > { %v1773_v40 = vadd.f32 1e-05, %v1771_v39 }
 0xed7   : > { %4697 = vrsqrt.f32 %v1773_v40 }
 0xedd   : > { %v4696_v41 = vpop.eup %4695 }
 0xede   : > { %v1776_v43 = vmul.f32 %v4696_v41, %v1760_v0 }
 0xee0   : > { %v1784_v47 = vmul.f32 %v3922_v45, %v1776_v43 }
 0xee1   : > { %v4698_v46 = vpop.eup %4697 }
 0xee2   : > { %v1777_v49 = vmul.f32 %v4698_v46, %v1761_v21  ;;  %v1792_v54 = vadd.f32 %v3923_v50, %v1784_v47 }
 0xee4   : > { %v1785_v53 = vmul.f32 %v3922_v45, %v1777_v49 }
 0xee6   : > { %v1793_v56 = vadd.f32 %v3923_v50, %v1785_v53 }
 0xee8   : > { %v1802_v58 = vpack.c.bf16 %v1793_v56, %v1792_v54 }
 0xeea   : > { %3932 = vmatmul.mubr.msk.bf16.vlgmr.msra.gmra.mrb[20].mxu1 %vm561_vm0, %v1802_v58 }
 0xeeb   : > { %2261 = vmatprep.mubr.bf16.mxu1 %v4767_v22 }
 0xfbd   : > { %v1892_v15 = vpop.f32.mrb[20].mxu1 }
 0xfbe   : > { %v1893_v16 = vadd.f32 %v1892_v15, %v1808_v12  ;;  %v1894_v17 = vpop.f32.mrb[21].mxu1 }
 0xfbf   : > { %v1895_v0 = vadd.f32 %v1894_v17, %v1812_v14  ;;  %v1896_v18 = vpop.f32.mrb[22].mxu1 }
 0xfc0   : > { %v1905_v19 = vmul.f32 0.044715, %v1893_v16  ;;  %v1897_v20 = vadd.f32 %v1896_v18, %v1808_v12  ;;  %v1898_v21 = vpop.f32.mrb[23].mxu1  ;;  %v1901_v56 = vmul.f32 0.5, %v1893_v16 }
 0xfc1   : > { %v1906_v1 = vmul.f32 0.044715, %v1895_v0  ;;  %v1899_v23 = vadd.f32 %v1898_v21, %v1812_v14  ;;  %v1902_v60 = vmul.f32 0.5, %v1895_v0 }
 0xfc2   : > { %v1909_v24 = vmul.f32 %v1905_v19, %v1893_v16  ;;  %v1907_v25 = vmul.f32 0.044715, %v1897_v20  ;;  %v1903_v58 = vmul.f32 0.5, %v1897_v20 }
 0xfc3   : > { %v1910_v26 = vmul.f32 %v1906_v1, %v1895_v0  ;;  %v1908_v27 = vmul.f32 0.044715, %v1899_v23  ;;  %v1904_v57 = vmul.f32 0.5, %v1899_v23 }
 0xfc4   : > { %v1913_v28 = vmul.f32 %v1909_v24, %v1893_v16  ;;  %v1911_v29 = vmul.f32 %v1907_v25, %v1897_v20 }
 0xfc5   : > { %v1914_v30 = vmul.f32 %v1910_v26, %v1895_v0  ;;  %v1912_v31 = vmul.f32 %v1908_v27, %v1899_v23  ;;  %v4613_v26 = vld [vmem:[%s5534_s3 + $0x44] ss:$8 sps:$4 sm:$0xff]   ;;  %v4611_v27 = vld [vmem:[%s5534_s3 + $0x40] ss:$8 sps:$4 sm:$0xff]  }
 0xfc6   : > { %v1917_v33 = vadd.f32 %v1913_v28, %v1893_v16  ;;  %v1915_v34 = vmul.f32 %v1911_v29, %v1897_v20  ;;  %2229 = vmatprep.subr.bf16.mxu1 %v4613_v26  ;;  %v4616_v28 = vld [vmem:[%s5534_s3 + $0x54] ss:$8 sps:$4 sm:$0xff]   ;;  %v4614_v29 = vld [vmem:[%s5534_s3 + $0x50] ss:$8 sps:$4 sm:$0xff]  }
 0xfc7   : > { %v1916_v36 = vmul.f32 %v1912_v31, %v1899_v23  ;;  %v1918_v37 = vadd.f32 %v1914_v30, %v1895_v0  ;;  %2230 = vmatpush1.bf16.msra.mxu1 %v4611_v27  ;;  %v4619_v30 = vld [vmem:[%s5534_s3 + $0x64] ss:$8 sps:$4 sm:$0xff]   ;;  %v4617_v31 = vld [vmem:[%s5534_s3 + $0x60] ss:$8 sps:$4 sm:$0xff]  }
 0xfc8   : > { %v1921_v38 = vmul.f32 0.7978846, %v1917_v33  ;;  %v1919_v39 = vadd.f32 %v1915_v34, %v1897_v20  ;;  %2231 = vmatprep.subr.bf16.mxu1 %v4616_v28  ;;  %v4620_v33 = vld [vmem:[%s5534_s3 + $0x70] ss:$8 sps:$4 sm:$0xff]   ;;  %v4622_v34 = vld [vmem:[%s5534_s3 + $0x74] ss:$8 sps:$4 sm:$0xff]  }
 0xfc9   : > { %v1920_v40 = vadd.f32 %v1916_v36, %v1899_v23  ;;  %v1922_v41 = vmul.f32 0.7978846, %v1918_v37 }
 0xfca   : > { %4699 = vtanh.f32 %v1921_v38  ;;  %v1923_v43 = vmul.f32 0.7978846, %v1919_v39 }
 0xfcb   : > { %v1924_v45 = vmul.f32 0.7978846, %v1920_v40  ;;  %4701 = vtanh.f32 %v1922_v41  ;;  %2232 = vmatpush1.bf16.msra.mxu1 %v4614_v29 }
 0xfcc   : > { %4703 = vtanh.f32 %v1923_v43  ;;  %2233 = vmatprep.subr.bf16.mxu1 %v4619_v30 }
 0xfcd   : > { %4705 = vtanh.f32 %v1924_v45 }
 0xfcf   : > { %2234 = vmatpush1.bf16.msra.mxu1 %v4617_v31 }
 0xfd0   : > { %2235 = vmatprep.subr.bf16.mxu1 %v4622_v34 }
 0xfd3   : > { %2236 = vmatpush1.bf16.msra.mxu1 %v4620_v33 }
 0xfd4   : > { %v4700_v46 = vpop.eup %4699 }
 0xfd5   : > { %v4702_v47 = vpop.eup %4701  ;;  %v1929_v49 = vadd.f32 1.0, %v4700_v46  ;;  %v3952_v46 = vld [vmem:[%s5561_s22 + $0x1] ss:$0 sm:$0xff] }
 0xfd6   : > { %v4704_v50 = vpop.eup %4703  ;;  %v1930_v53 = vadd.f32 1.0, %v4702_v47 }
 0xfd7   : > { %v4706_v54 = vpop.eup %4705  ;;  %v1931_v59 = vadd.f32 1.0, %v4704_v50  ;;  %v1933_v48 = vmul.f32 %v1929_v49, %v1901_v56 }
 0xfd8   : > { %v1932_v55 = vadd.f32 1.0, %v4706_v54  ;;  %v1934_v35 = vmul.f32 %v1930_v53, %v1902_v60  ;;  %v3953_v53 = vld [vmem:[%s5533_s2 + $0x1] ss:$0 sm:$0xff]  ;;  %v3962_v60 = vld [vmem:[%s5535_s4 + $0x2] sm:$0x3] }
 0xfd9   : > { %v1935_v32 = vmul.f32 %v1931_v59, %v1903_v58 }
 0xfda   : > { %v1936_v51 = vmul.f32 %v1932_v55, %v1904_v57  ;;  %v2179_v57 = vrot.slane %v3962_v60, %v4927_v42 }
 0xfdb   : > { %v1969_v62 = vpack.c.bf16 %v1935_v32, %v1933_v48  ;;  %v2183_v48 = vrot.slane %v3962_v60, %v4932_v44 }
 0xfdc   : > { %v1970_v63 = vpack.c.bf16 %v1936_v51, %v1934_v35 }
 0xfde   : > { %2106 = vmatprep.mubr.bf16.mxu0 %v1970_v63 }
 0xfdf   : > { %2107 = vmatmul.mubr.bf16.vlgmr.msra.gmra.mrb[20].mxu0 %v1969_v62 }
0x10b2   : > { %v4154_v2 = vpop.f32.mrb[20].mxu0 }
0x10b3   : > { %v4155_v4 = vpop.f32.mrb[21].mxu0 }
0x10b4   : > { %v4156_v6 = vadd.f32 %v4155_v4, %v4154_v2  ;;  %v4157_v7 = vpop.f32.mrb[22].mxu0 }
0x10b5   : > { %v4158_v9 = vpop.f32.mrb[23].mxu0 }
0x10b6   : > { %v2109_v10 = vadd.f32 %v4156_v6, %v3933_v3  ;;  %v4159_v12 = vadd.f32 %v4158_v9, %v4157_v7 }
0x10b8   : > { %v5199_v14 = vadd.f32 %v2109_v10, %v5097_v11  ;;  %v2112_v15 = vadd.f32 %v4159_v12, %v3933_v3 }
0x10ba   : > { %v5202_v16 = vadd.f32 %v2112_v15, %v5100_v13  ;;  %v2121_v17 = vsel %vm561_vm0, %v5199_v14, 0.0 }
0x10bb   : > { %2122 = vadd.xlane.f32.xlu1 %v2121_v17 }
0x10bc   : > { %v2124_v0 = vsel %vm561_vm0, %v5202_v16, 0.0 }
0x10bf   : > { %2125 = vadd.xlane.f32.xlu1 %v2124_v0 }
0x1148   : > { %v2123_v18 = vpop.xlane.xlu1 %2122 }
0x1149   : > { %v2127_v19 = vmul.f32 0.015625, %v2123_v18 }
0x114b   : > { %v2129_v20 = vsub.f32 %v5199_v14, %v2127_v19 }
0x114c   : > { %v2126_v21 = vpop.xlane.xlu1 %2125 }
0x114d   : > { %v2128_v1 = vmul.f32 0.015625, %v2126_v21  ;;  %v2131_v11 = vmul.f32 %v2129_v20, %v2129_v20 }
0x114f   : > { %v2130_v23 = vsub.f32 %v5202_v16, %v2128_v1  ;;  %v2133_v13 = vsel %vm561_vm0, %v2131_v11, 0.0 }
0x1150   : > { %2134 = vadd.xlane.f32.xlu0 %v2133_v13 }
0x1151   : > { %v2132_v24 = vmul.f32 %v2130_v23, %v2130_v23 }
0x1153   : > { %v2136_v25 = vsel %vm561_vm0, %v2132_v24, 0.0 }
0x1154   : > { %2137 = vadd.xlane.f32.xlu1 %v2136_v25 }
0x11dd   : > { %v2135_v36 = vpop.xlane.xlu0 %2134 }
0x11de   : > { %v2139_v37 = vmul.f32 0.015625, %v2135_v36 }
0x11e0   : > { %v2141_v38 = vadd.f32 1e-05, %v2139_v37 }
0x11e1   : > { %v2138_v39 = vpop.xlane.xlu1 %2137 }
0x11e2   : > { %4707 = vrsqrt.f32 %v2141_v38  ;;  %v2140_v40 = vmul.f32 0.015625, %v2138_v39 }
0x11e4   : > { %v2142_v41 = vadd.f32 1e-05, %v2140_v40 }
0x11e6   : > { %4709 = vrsqrt.f32 %v2142_v41 }
0x11ec   : > { %v4708_v43 = vpop.eup %4707 }
0x11ed   : > { %v2145_v45 = vmul.f32 %v4708_v43, %v2129_v20 }
0x11ef   : > { %v2153_v49 = vmul.f32 %v3952_v46, %v2145_v45 }
0x11f0   : > { %v4710_v47 = vpop.eup %4709 }
0x11f1   : > { %v2146_v50 = vmul.f32 %v4710_v47, %v2130_v23  ;;  %v2161_v56 = vadd.f32 %v3953_v53, %v2153_v49 }
0x11f3   : > { %v2154_v54 = vmul.f32 %v3952_v46, %v2146_v50 }
0x11f5   : > { %v2162_v58 = vadd.f32 %v3953_v53, %v2154_v54 }
0x11f7   : > { %v2172_v59 = vpack.c.bf16 %v2162_v58, %v2161_v56 }
0x11f9   : > { %3971 = vmatmul.mubr.msk.bf16.vlgmr.msra.gmra.mrb[24].mxu1 %vm561_vm0, %v2172_v59 }
0x12cc   : > { %v2263_v55 = vpop.f32.mrb[24].mxu1 }
0x12cd   : > { %v5248_v32 = vadd.f32 %v2263_v55, %v2179_v57  ;;  %v2265_v35 = vpop.f32.mrb[25].mxu1 }
0x12ce   : > { %v2267_v51 = vpop.f32.mrb[26].mxu1  ;;  %v2266_v2 = vadd.f32 %v2265_v35, %v2183_v48 }
0x12cf   : > { %v5250_v62 = vadd.f32 %v2267_v51, %v2179_v57  ;;  %v2269_v63 = vpop.f32.mrb[27].mxu1  ;;  %4311 = vmatprep.mubr.msk.f32.mxu1 %vm726_vm1, %v5248_v32 }
0x12d0   : > { %v2270_v3 = vadd.f32 %v2269_v63, %v2183_v48 }
0x12d1   : > { %2480 = vrot.lane.b32.xlu0 %v5250_v62, %s4769_s30  ;;  %v5258_v4 = vpack.i.bf16 %v5250_v62, %v5248_v32 }
0x12d2   : > { %v4445_v6 = vpack.c.bf16 %v2270_v3, %v2266_v2  ;;  %v5260_v7 = vpack.i.bf16 %v2270_v3, %v2266_v2 }
0x12d3   : > { %4533 = vrot.lane.b32.xlu1 %v5258_v4, %s4768_s0  ;;  %s5569_s0 = smov 96  }
0x12d4   : > { %4446 = vmatprep.subr.bf16.mxu0 %v4445_v6 }
0x12d5   : > { %4448 = vmatpush3.bf16.msra.mxu0 %v4445_v6 }
0x12d7   : > { %4538 = vrot.lane.b32.xlu1 %v5258_v4, %s5568_s21 }
0x12db   : > { %2478 = vrot.lane.b32.xlu1 %v5248_v32, %s4769_s30 }
0x1343   : > { %v2481_v21 = vpop.permute.xlu0 %2480 }
0x1345   : > { %v4534_v9 = vpop.permute.xlu1 %4533 }
0x1346   : > { %v4536_v10 = vunpack.i.h.bf16 %v4534_v9  ;;  %v4535_v12 = vunpack.i.l.bf16 %v4534_v9 }
0x1348   : > { %v4439_v15 = vpack.c.bf16 %v4536_v10, %v4535_v12 }
0x1349   : > { %v4539_v17 = vpop.permute.xlu1 %4538 }
0x134a   : > { %v4541_v0 = vunpack.i.h.bf16 %v4539_v17  ;;  %v4540_v18 = vunpack.i.l.bf16 %v4539_v17  ;;  %4441 = vmatprep.subr.msk.bf16.mxu1 %vm4956_vm2, %v4439_v15 }
0x134b   : > { %4444 = vmatpush3.bf16.xpose.msk.msra.mxu1 %vm4956_vm2, %v4439_v15 }
0x134c   : > { %v4449_v19 = vpack.c.bf16 %v4541_v0, %v4540_v18 }
0x134d   : > { %v2479_v20 = vpop.permute.xlu1 %2478 }
0x134e   : > { %4451 = vmatprep.subr.msk.bf16.mxu1 %vm4956_vm2, %v4449_v19 }
0x1352   : > { %4312 = vmatmul.mubr.msk.f32.vlgmr.msra.gmra.mrb[18].mxu1 %vm726_vm1, %v5250_v62 }
0x1353   : > { %4454 = vmatpush3.bf16.xpose.msk.msra.mxu1 %vm4956_vm2, %v4449_v19  ;;  %4325 = vmatprep.mubr.msk.f32.mxu1 %vm726_vm1, %v2479_v20 }
0x1354   : > { %4341 = vmatprep.subr.bf16.mxu1 %v4772_v52 }
0x135a   : > { %4326 = vmatmul.mubr.msk.f32.vlgmr.msra.gmra.mrb[28].mxu1 %vm726_vm1, %v2481_v21 }
0x135b   : > { %4343 = vmatprep.mubr.msk.bf16.mxu1 %vm4774_vm5, %v4772_v52 }
0x1425   : > { %v4313_v1 = vpop.f32.mrb[18].mxu1 }
0x1426   : > { %v2371_v11 = vmul.f32 0.25, %v4313_v1  ;;  %v2361_v23 = vpop.f32.mrb[19].mxu1 }
0x1427   : > { %v2370_v13 = vmul.f32 0.25, %v2361_v23 }
0x1428   : > { %v2373_v24 = vsel %vm4970_vm4, %v2371_v11, -1e+30 }
0x1429   : > { %v2377_v25 = vsel %vm726_vm1, %v2373_v24, -inf  ;;  %v2372_v26 = vsel %vm4966_vm3, %v2370_v13, -1e+30  ;;  %v4623_v13 = vld [vmem:[%s5536_s5 + $0x28] sm:$0xff]  }
0x142a   : > { %2378 = vmax.xlane.f32.xlu0 %v2377_v25  ;;  %v2374_v27 = vsel %vm726_vm1, %v2372_v26, -inf }
0x142b   : > { %2375 = vmax.xlane.f32.xlu1 %v2374_v27 }
0x142d   : > { %v4327_v28 = vpop.f32.mrb[28].mxu1 }
0x142e   : > { %v2560_v29 = vpop.f32.mrb[29].mxu1  ;;  %v2570_v30 = vmul.f32 0.25, %v4327_v28 }
0x142f   : > { %v2569_v31 = vmul.f32 0.25, %v2560_v29 }
0x1430   : > { %v2572_v36 = vsel %vm4970_vm4, %v2570_v30, -1e+30 }
0x1431   : > { %v2571_v33 = vsel %vm4966_vm3, %v2569_v31, -1e+30  ;;  %v2576_v37 = vsel %vm726_vm1, %v2572_v36, -inf }
0x1432   : > { %v2573_v34 = vsel %vm726_vm1, %v2571_v33, -inf }
0x1433   : > { %2574 = vmax.xlane.f32.xlu1 %v2573_v34 }
0x1437   : > { %2577 = vmax.xlane.f32.xlu1 %v2576_v37 }
0x14b7   : > { %v2379_v38 = vpop.xlane.xlu0 %2378 }
0x14b8   : > { %v2381_v39 = vsub.f32 %v2373_v24, %v2379_v38  ;;  %v2376_v40 = vpop.xlane.xlu1 %2375 }
0x14b9   : > { %v2380_v41 = vsub.f32 %v2372_v26, %v2376_v40  ;;  %v4624_v26 = vld [vmem:[%s5536_s5 + $0x20] sm:$0xff]  }
0x14ba   : > { %v2384_v43 = vmul.f32 1.442695, %v2381_v39  ;;  %4342 = vmatpush3.bf16.msra.mxu1 %v4624_v26 }
0x14bb   : > { %v2382_v45 = vmul.f32 1.442695, %v2380_v41 }
0x14bc   : > { %4711 = vpow2.f32 %v2384_v43 }
0x14bd   : > { %4713 = vpow2.f32 %v2382_v45 }
0x14c0   : > { %v2575_v46 = vpop.xlane.xlu1 %2574 }
0x14c1   : > { %v2579_v47 = vsub.f32 %v2571_v33, %v2575_v46 }
0x14c3   : > { %v2581_v49 = vmul.f32 1.442695, %v2579_v47 }
0x14c4   : > { %v2578_v50 = vpop.xlane.xlu1 %2577 }
0x14c5   : > { %4715 = vpow2.f32 %v2581_v49  ;;  %v2580_v53 = vsub.f32 %v2572_v36, %v2578_v50 }
0x14c6   : > { %v4712_v54 = vpop.eup %4711 }
0x14c7   : > { %v2583_v56 = vmul.f32 1.442695, %v2580_v53  ;;  %v2389_v58 = vsel %vm726_vm1, %v4712_v54, 0.0  ;;  %v4714_v59 = vpop.eup %4713 }
0x14c8   : > { %2390 = vadd.xlane.f32.xlu1 %v2389_v58  ;;  %v2386_v60 = vsel %vm726_vm1, %v4714_v59, 0.0 }
0x14c9   : > { %4717 = vpow2.f32 %v2583_v56 }
0x14cc   : > { %2387 = vadd.xlane.f32.xlu1 %v2386_v60 }
0x14cf   : > { %v4716_v57 = vpop.eup %4715 }
0x14d0   : > { %v2585_v55 = vsel %vm726_vm1, %v4716_v57, 0.0 }
0x14d1   : > { %2586 = vadd.xlane.f32.xlu1 %v2585_v55 }
0x14d3   : > { %v4718_v48 = vpop.eup %4717 }
0x14d4   : > { %v2588_v35 = vsel %vm726_vm1, %v4718_v48, 0.0 }
0x14d5   : > { %2589 = vadd.xlane.f32.xlu0 %v2588_v35 }
0x14e2   : > { %4543 = vrot.lane.b32.xlu1 %v5260_v7, %s4769_s30 }
0x14e6   : > { %2785 = vrot.lane.b32.xlu1 %v5248_v32, %s5569_s0 }
0x14ea   : > { %2787 = vrot.lane.b32.xlu1 %v5250_v62, %s5569_s0 }
0x14eb   : > { %4548 = vrot.lane.b32.xlu0 %v5258_v4, %s5570_s29 }
0x1555   : > { %v2391_v51 = vpop.xlane.xlu1 %2390 }
0x1556   : > { %4719 = vrcp.f32 %v2391_v51 }
0x1559   : > { %v2388_v63 = vpop.xlane.xlu1 %2387 }
0x155a   : > { %4721 = vrcp.f32 %v2388_v63 }
0x155e   : > { %v2587_v2 = vpop.xlane.xlu1 %2586 }
0x155f   : > { %4723 = vrcp.f32 %v2587_v2 }
0x1560   : > { %v4720_v9 = vpop.eup %4719 }
0x1561   : > { %v2395_v18 = vmul.f32 %v4720_v9, %v4712_v54 }
0x1562   : > { %v2590_v3 = vpop.xlane.xlu0 %2589  ;;  %v4544_v6 = vpop.permute.xlu1 %4543 }
0x1563   : > { %4725 = vrcp.f32 %v2590_v3  ;;  %v4546_v10 = vunpack.i.h.bf16 %v4544_v6  ;;  %v4545_v12 = vunpack.i.l.bf16 %v4544_v6 }
0x1564   : > { %v4722_v15 = vpop.eup %4721 }
0x1565   : > { %v4455_v17 = vpack.c.bf16 %v4546_v10, %v4545_v12  ;;  %v2394_v0 = vmul.f32 %v4722_v15, %v4714_v59 }
0x1566   : > { %v4549_v20 = vpop.permute.xlu0 %4548  ;;  %v2786_v34 = vpop.permute.xlu1 %2785 }
0x1567   : > { %4318 = vmatprep.mubr.msk.f32.mxu0 %vm726_vm1, %v2394_v0  ;;  %4456 = vmatprep.subr.bf16.mxu0 %v4455_v17  ;;  %v4551_v1 = vunpack.i.h.bf16 %v4549_v20  ;;  %v4550_v11 = vunpack.i.l.bf16 %v4549_v20 }
0x1568   : > { %4319 = vmatmul.mubr.msk.f32.vlgmr.msra.gmra.mrb[14].mxu0 %vm726_vm1, %v2395_v18 }
0x1569   : > { %v4724_v19 = vpop.eup %4723  ;;  %4458 = vmatpush3.bf16.msra.mxu0 %v4455_v17  ;;  %v4459_v25 = vpack.c.bf16 %v4551_v1, %v4550_v11 }
0x156a   : > { %v2593_v21 = vmul.f32 %v4724_v19, %v4716_v57  ;;  %4335 = vmatprep.subr.bf16.mxu0 %v4772_v52  ;;  %v2788_v36 = vpop.permute.xlu1 %2787 }
0x156c   : > { %4332 = vmatprep.mubr.msk.f32.mxu0 %vm726_vm1, %v2593_v21 }
0x156d   : > { %v4726_v23 = vpop.eup %4725 }
0x156e   : > { %v2594_v24 = vmul.f32 %v4726_v23, %v4718_v48 }
0x1570   : > { %4333 = vmatmul.mubr.msk.f32.vlgmr.msra.gmra.mrb[24].mxu0 %vm726_vm1, %v2594_v24 }
0x1571   : > { %4336 = vmatpush3.bf16.msra.mxu0 %v4623_v13  ;;  %4337 = vmatprep.mubr.msk.bf16.mxu0 %vm4774_vm5, %v4772_v52 }
0x1572   : > { %4461 = vmatprep.subr.msk.bf16.mxu0 %vm4956_vm2, %v4459_v25 }
0x163b   : > { %v4320_v27 = vpop.f32.mrb[14].mxu0 }
0x163c   : > { %v2468_v28 = vpop.f32.mrb[15].mxu0 }
0x163d   : > { %v2477_v29 = vpack.c.bf16 %v4320_v27, %v2468_v28 }
0x163f   : > { %4344 = vmatmul.mubr.msk.bf16.vlgmr.msra.gmra.mrb[32].mxu1 %vm726_vm1, %v2477_v29 }
0x1643   : > { %v4334_v30 = vpop.f32.mrb[24].mxu0 }
0x1644   : > { %v2675_v31 = vpop.f32.mrb[25].mxu0 }
0x1645   : > { %v2684_v33 = vpack.c.bf16 %v4334_v30, %v2675_v31 }
0x1647   : > { %4338 = vmatmul.mubr.msk.bf16.vlgmr.msra.gmra.mrb[28].mxu0 %vm726_vm1, %v2684_v33 }
0x1648   : > { %4464 = vmatpush3.bf16.xpose.msk.msra.mxu0 %vm4956_vm2, %v4459_v25  ;;  %4351 = vmatprep.mubr.msk.f32.mxu0 %vm726_vm1, %v2786_v34  ;;  %v4625_v25 = vld [vmem:[%s5536_s5 + $0x30] sm:$0xff]  }
0x1649   : > { %4361 = vmatprep.subr.bf16.mxu0 %v4772_v52 }
0x164f   : > { %4352 = vmatmul.mubr.msk.f32.vlgmr.msra.gmra.mrb[26].mxu0 %vm726_vm1, %v2788_v36 }
0x1650   : > { %4363 = vmatprep.mubr.msk.bf16.mxu0 %vm4774_vm5, %v4772_v52  ;;  %4362 = vmatpush3.bf16.msra.mxu0 %v4625_v25 }
0x1712   : > { %v2778_v37 = vpop.f32.mrb[32].mxu1 }
0x1713   : > { %v4345_v38 = vpop.f32.mrb[33].mxu1 }
0x1714   : > { %v2781_v39 = vpop.f32.mrb[34].mxu1 }
0x1715   : > { %v4346_v40 = vpop.f32.mrb[35].mxu1 }
0x171a   : > { %v2728_v41 = vpop.f32.mrb[28].mxu0 }
0x171b   : > { %v5331_v43 = vadd.f32 %v2778_v37, %v2728_v41  ;;  %v4339_v45 = vpop.f32.mrb[29].mxu0 }
0x171c   : > { %v2731_v46 = vpop.f32.mrb[30].mxu0 }
0x171d   : > { %v5333_v47 = vadd.f32 %v2781_v39, %v2731_v46  ;;  %v4340_v49 = vpop.f32.mrb[31].mxu0 }
0x1722   : > { %v4353_v50 = vpop.f32.mrb[26].mxu0 }
0x1723   : > { %v2877_v53 = vmul.f32 0.25, %v4353_v50  ;;  %v2867_v54 = vpop.f32.mrb[27].mxu0 }
0x1724   : > { %v2876_v56 = vmul.f32 0.25, %v2867_v54 }
0x1725   : > { %v2879_v58 = vsel %vm4970_vm4, %v2877_v53, -1e+30 }
0x1726   : > { %v2883_v59 = vsel %vm726_vm1, %v2879_v58, -inf  ;;  %v2878_v60 = vsel %vm4966_vm3, %v2876_v56, -1e+30 }
0x1727   : > { %2884 = vmax.xlane.f32.xlu1 %v2883_v59  ;;  %v2880_v57 = vsel %vm726_vm1, %v2878_v60, -inf }
0x1728   : > { %2881 = vmax.xlane.f32.xlu0 %v2880_v57 }
0x1738   : > { %4553 = vrot.lane.b32.xlu1 %v5260_v7, %s5569_s0  ;;  %s5573_s0 = sshll.u32 %s5575_s25, 4 }
0x1739   : > { %s548_s23 = scalar_lea.vmem %s5548_s17, %s5573_s0 }
0x173c   : > { %3042 = vrot.lane.b32.xlu1 %v5248_v32, %s5571_s20 }
0x1740   : > { %3044 = vrot.lane.b32.xlu1 %v5250_v62, %s5571_s20 }
0x17b4   : > { %v2885_v55 = vpop.xlane.xlu1 %2884 }
0x17b5   : > { %v2887_v48 = vsub.f32 %v2879_v58, %v2885_v55  ;;  %v2882_v35 = vpop.xlane.xlu0 %2881 }
0x17b6   : > { %v2886_v51 = vsub.f32 %v2878_v60, %v2882_v35 }
0x17b7   : > { %v2890_v63 = vmul.f32 1.442695, %v2887_v48 }
0x17b8   : > { %v2888_v2 = vmul.f32 1.442695, %v2886_v51  ;;  %v4554_v3 = vpop.permute.xlu1 %4553 }
0x17b9   : > { %4727 = vpow2.f32 %v2890_v63  ;;  %v4556_v6 = vunpack.i.h.bf16 %v4554_v3  ;;  %v4555_v9 = vunpack.i.l.bf16 %v4554_v3 }
0x17ba   : > { %4729 = vpow2.f32 %v2888_v2 }
0x17bb   : > { %v4465_v10 = vpack.c.bf16 %v4556_v6, %v4555_v9 }
0x17bc   : > { %v3043_v24 = vpop.permute.xlu1 %3042 }
0x17bd   : > { %4466 = vmatprep.subr.bf16.mxu1 %v4465_v10 }
0x17be   : > { %4468 = vmatpush3.bf16.msra.mxu1 %v4465_v10 }
0x17c3   : > { %v4728_v12 = vpop.eup %4727 }
0x17c4   : > { %v2895_v32 = vsel %vm726_vm1, %v4728_v12, 0.0  ;;  %v4730_v15 = vpop.eup %4729 }
0x17c5   : > { %2896 = vadd.xlane.f32.xlu0 %v2895_v32  ;;  %v2892_v62 = vsel %vm726_vm1, %v4730_v15, 0.0 }
0x17c9   : > { %2893 = vadd.xlane.f32.xlu0 %v2892_v62  ;;  %v4013_v62 = vld [vmem:[%s5537_s6 + $0x1] ss:$0 sm:$0xff] }
0x17df   : > { %4558 = vrot.lane.b32.xlu0 %v5258_v4, %s5572_s26  ;;  %v3045_v4 = vpop.permute.xlu1 %3044 }
0x1852   : > { %v2897_v17 = vpop.xlane.xlu0 %2896 }
0x1853   : > { %4731 = vrcp.f32 %v2897_v17 }
0x1856   : > { %v2894_v0 = vpop.xlane.xlu0 %2893 }
0x1857   : > { %4733 = vrcp.f32 %v2894_v0 }
0x185a   : > { %v4559_v18 = vpop.permute.xlu0 %4558 }
0x185b   : > { %v4561_v19 = vunpack.i.h.bf16 %v4559_v18  ;;  %v4560_v20 = vunpack.i.l.bf16 %v4559_v18 }
0x185d   : > { %v4469_v21 = vpack.c.bf16 %v4561_v19, %v4560_v20  ;;  %v4732_v1 = vpop.eup %4731 }
0x185e   : > { %v2901_v13 = vmul.f32 %v4732_v1, %v4728_v12 }
0x185f   : > { %4471 = vmatprep.subr.msk.bf16.mxu1 %vm4956_vm2, %v4469_v21 }
0x1861   : > { %v4734_v11 = vpop.eup %4733 }
0x1862   : > { %v2900_v23 = vmul.f32 %v4734_v11, %v4730_v15 }
0x1864   : > { %4358 = vmatprep.mubr.msk.f32.mxu1 %vm726_vm1, %v2900_v23 }
0x1865   : > { %4359 = vmatmul.mubr.msk.f32.vlgmr.msra.gmra.mrb[30].mxu1 %vm726_vm1, %v2901_v13 }
0x1866   : > { %4474 = vmatpush3.bf16.xpose.msk.msra.mxu1 %vm4956_vm2, %v4469_v21  ;;  %4371 = vmatprep.mubr.msk.f32.mxu1 %vm726_vm1, %v3043_v24 }
0x1867   : > { %4381 = vmatprep.subr.bf16.mxu1 %v4772_v52 }
0x186d   : > { %4372 = vmatmul.mubr.msk.f32.vlgmr.msra.gmra.mrb[36].mxu1 %vm726_vm1, %v3045_v4 }
0x186e   : > { %4383 = vmatprep.mubr.msk.bf16.mxu1 %vm4774_vm5, %v4772_v52 }
0x1938   : > { %v4360_v26 = vpop.f32.mrb[30].mxu1 }
0x1939   : > { %v2980_v27 = vpop.f32.mrb[31].mxu1 }
0x193a   : > { %v2989_v28 = vpack.c.bf16 %v4360_v26, %v2980_v27 }
0x193c   : > { %4364 = vmatmul.mubr.msk.bf16.vlgmr.msra.gmra.mrb[32].mxu0 %vm726_vm1, %v2989_v28 }
0x1940   : > { %v4373_v61 = vpop.f32.mrb[36].mxu1 }
0x1941   : > { %v3134_v29 = vmul.f32 0.25, %v4373_v61  ;;  %v3124_v30 = vpop.f32.mrb[37].mxu1  ;;  %v4629_v61 = vld [vmem:[%s5540_s9 + $0x44] ss:$8 sps:$4 sm:$0xff]  }
0x1942   : > { %v3133_v31 = vmul.f32 0.25, %v3124_v30  ;;  %v4632_v30 = vld [vmem:[%s5540_s9 + $0x54] ss:$8 sps:$4 sm:$0xff]  }
0x1943   : > { %v3136_v33 = vsel %vm4970_vm4, %v3134_v29, -1e+30  ;;  %v4627_v29 = vld [vmem:[%s5540_s9 + $0x40] ss:$8 sps:$4 sm:$0xff]  }
0x1944   : > { %v3140_v34 = vsel %vm726_vm1, %v3136_v33, -inf  ;;  %v3135_v36 = vsel %vm4966_vm3, %v3133_v31, -1e+30  ;;  %v4630_v31 = vld [vmem:[%s5540_s9 + $0x50] ss:$8 sps:$4 sm:$0xff]  }
0x1945   : > { %3141 = vmax.xlane.f32.xlu1 %v3140_v34  ;;  %v3137_v37 = vsel %vm726_vm1, %v3135_v36, -inf  ;;  %v4633_v34 = vld [vmem:[%s5540_s9 + $0x60] ss:$8 sps:$4 sm:$0xff]  }
0x1946   : > { %3138 = vmax.xlane.f32.xlu0 %v3137_v37  ;;  %v4638_v37 = vld [vmem:[%s5540_s9 + $0x74] ss:$8 sps:$4 sm:$0xff]  }
0x1956   : > { %4563 = vrot.lane.b32.xlu1 %v5260_v7, %s5571_s20 }
0x19d2   : > { %v3142_v38 = vpop.xlane.xlu1 %3141 }
0x19d3   : > { %v3144_v39 = vsub.f32 %v3136_v33, %v3142_v38  ;;  %v3139_v40 = vpop.xlane.xlu0 %3138  ;;  %v4635_v33 = vld [vmem:[%s5540_s9 + $0x64] ss:$8 sps:$4 sm:$0xff]  }
0x19d4   : > { %v3143_v41 = vsub.f32 %v3135_v36, %v3139_v40  ;;  %v4636_v36 = vld [vmem:[%s5540_s9 + $0x70] ss:$8 sps:$4 sm:$0xff]  }
0x19d5   : > { %v3147_v45 = vmul.f32 1.442695, %v3144_v39 }
0x19d6   : > { %v3145_v46 = vmul.f32 1.442695, %v3143_v41  ;;  %v4564_v8 = vpop.permute.xlu1 %4563 }
0x19d7   : > { %v4566_v49 = vunpack.i.h.bf16 %v4564_v8  ;;  %v4565_v50 = vunpack.i.l.bf16 %v4564_v8 }
0x19d8   : > { %4735 = vpow2.f32 %v3145_v46 }
0x19d9   : > { %v4475_v53 = vpack.c.bf16 %v4566_v49, %v4565_v50  ;;  %4737 = vpow2.f32 %v3147_v45  ;;  %v4016_v50 = vld [vmem:[%s5538_s7 + $0x1] ss:$0 sm:$0xff] }
0x19db   : > { %4476 = vmatprep.subr.bf16.mxu0 %v4475_v53 }
0x19dc   : > { %4478 = vmatpush3.bf16.msra.mxu0 %v4475_v53 }
0x19dd   : > { %3423 = vmatprep.subr.bf16.mxu0 %v4629_v61 }
0x19e2   : > { %v4736_v5 = vpop.eup %4735 }
0x19e3   : > { %v3149_v54 = vsel %vm726_vm1, %v4736_v5, 0.0  ;;  %v4738_v56 = vpop.eup %4737 }
0x19e4   : > { %3150 = vadd.xlane.f32.xlu0 %v3149_v54  ;;  %v3152_v7 = vsel %vm726_vm1, %v4738_v56, 0.0 }
0x19e8   : > { %3153 = vadd.xlane.f32.xlu0 %v3152_v7 }
0x1a0f   : > { %v3033_v58 = vpop.f32.mrb[32].mxu0 }
0x1a10   : > { %v3040_v59 = vadd.f32 %v3033_v58, %v5331_v43  ;;  %v4365_v60 = vpop.f32.mrb[33].mxu0  ;;  %v4626_v43 = vld [vmem:[%s5536_s5 + $0x38] sm:$0xff]  }
0x1a11   : > { %v3036_v57 = vpop.f32.mrb[34].mxu0  ;;  %4382 = vmatpush3.bf16.msra.mxu1 %v4626_v43  ;;  %v4648_v43 = vld [vmem:[%s5542_s11 + $0xa0] sm:$0xff]  }
0x1a12   : > { %v3041_v55 = vadd.f32 %v3036_v57, %v5333_v47  ;;  %v4366_v48 = vpop.f32.mrb[35].mxu0  ;;  %v4639_v57 = vld [vmem:[%s5542_s11 + $0xc0] sm:$0xff]  }
0x1a13   : > { %4200 = vmatprep.subr.bf16.mxu1 %v4639_v57  ;;  %v4641_v48 = vld [vmem:[%s5542_s11 + $0xc8] sm:$0xff]  }
0x1a71   : > { %v3151_v35 = vpop.xlane.xlu0 %3150 }
0x1a72   : > { %4739 = vrcp.f32 %v3151_v35  ;;  %v4642_v35 = vld [vmem:[%s5542_s11 + $0x88] sm:$0xff]  }
0x1a75   : > { %v3154_v51 = vpop.xlane.xlu0 %3153 }
0x1a76   : > { %4741 = vrcp.f32 %v3154_v51  ;;  %v4643_v51 = vld [vmem:[%s5542_s11 + $0xd0] sm:$0xff]  }
0x1a7c   : > { %v4740_v63 = vpop.eup %4739 }
0x1a7d   : > { %v3157_v2 = vmul.f32 %v4740_v63, %v4736_v5  ;;  %v4644_v63 = vld [vmem:[%s5542_s11 + $0x90] sm:$0xff]  }
0x1a7f   : > { %4378 = vmatprep.mubr.msk.f32.mxu0 %vm726_vm1, %v3157_v2  ;;  %v4645_v2 = vld [vmem:[%s5542_s11 + $0xd8] sm:$0xff]  }
0x1a80   : > { %v4742_v3 = vpop.eup %4741 }
0x1a81   : > { %v3158_v6 = vmul.f32 %v4742_v3, %v4738_v56  ;;  %v4017_v56 = vld [vmem:[%s5539_s8 + $0x1] ss:$0 sm:$0xff]  ;;  %v4646_v3 = vld [vmem:[%s5542_s11 + $0x98] sm:$0xff]  }
0x1a83   : > { %4379 = vmatmul.mubr.msk.f32.vlgmr.msra.gmra.mrb[36].mxu0 %vm726_vm1, %v3158_v6  ;;  %v4647_v6 = vld [vmem:[%s5542_s11 + $0xe0] sm:$0xff]  }
0x1a84   : > { %3455 = vmatprep.mubr.bf16.mxu0 %v4767_v22  ;;  %3424 = vmatpush1.bf16.msra.mxu0 %v4627_v29 }
0x1a85   : > { %3425 = vmatprep.subr.bf16.mxu0 %v4632_v30 }
0x1a88   : > { %3426 = vmatpush1.bf16.msra.mxu0 %v4630_v31 }
0x1a89   : > { %3427 = vmatprep.subr.bf16.mxu0 %v4635_v33 }
0x1a8c   : > { %3428 = vmatpush1.bf16.msra.mxu0 %v4633_v34 }
0x1a8d   : > { %3429 = vmatprep.subr.bf16.mxu0 %v4638_v37 }
0x1a90   : > { %3430 = vmatpush1.bf16.msra.mxu0 %v4636_v36 }
0x1a91   : > { %4387 = vmatprep.subr.bf16.mxu0 %v4772_v52 }
0x1b56   : > { %v4380_v47 = vpop.f32.mrb[36].mxu0 }
0x1b57   : > { %v3237_v9 = vpop.f32.mrb[37].mxu0 }
0x1b58   : > { %v3246_v10 = vpack.c.bf16 %v4380_v47, %v3237_v9  ;;  %v4649_v47 = vld [vmem:[%s5542_s11 + $0xe8] sm:$0xff]  }
0x1b59   : > { %v4650_v9 = vld [vmem:[%s5542_s11 + $0xa8] sm:$0xff]  }
0x1b5a   : > { %4384 = vmatmul.mubr.msk.bf16.vlgmr.msra.gmra.mrb[40].mxu1 %vm726_vm1, %v3246_v10  ;;  %v4651_v10 = vld [vmem:[%s5542_s11 + $0xf0] sm:$0xff]  }
0x1c2d   : > { %v3290_v12 = vpop.f32.mrb[40].mxu1 }
0x1c2e   : > { %v3297_v32 = vadd.f32 %v3290_v12, %v3040_v59  ;;  %v4385_v15 = vpop.f32.mrb[41].mxu1  ;;  %v4652_v12 = vld [vmem:[%s5542_s11 + $0xb0] sm:$0xff]  }
0x1c2f   : > { %v3293_v17 = vpop.f32.mrb[42].mxu1  ;;  %v4654_v15 = vld [vmem:[%s5542_s11 + $0xb8] sm:$0xff]  }
0x1c30   : > { %v3299_v22 = vadd.f32 %v3297_v32, %v5199_v14  ;;  %v3298_v0 = vadd.f32 %v3293_v17, %v3041_v55  ;;  %v4386_v18 = vpop.f32.mrb[43].mxu1  ;;  %v4640_v55 = vld [vmem:[%s5542_s11 + $0x80] sm:$0xff]   ;;  %v4653_v32 = vld [vmem:[%s5542_s11 + $0xf8] sm:$0xff]  }
0x1c31   : > { %4201 = vmatpush3.bf16.msra.mxu1 %v4640_v55 }
0x1c32   : > { %v5389_v19 = vadd.f32 %v4013_v62, %v3299_v22  ;;  %v3300_v20 = vadd.f32 %v3298_v0, %v5202_v16  ;;  %4202 = vmatprep.subr.bf16.mxu1 %v4641_v48 }
0x1c34   : > { %v5392_v21 = vadd.f32 %v4013_v62, %v3300_v20  ;;  %v3315_v1 = vsel %vm561_vm0, %v5389_v19, 0.0  ;;  %v4026_v62 = vld [vmem:[%s5541_s10 + $0x2] sm:$0x3] }
0x1c35   : > { %3316 = vadd.xlane.f32.xlu0 %v3315_v1  ;;  %4203 = vmatpush3.bf16.msra.mxu1 %v4642_v35  ;;  %v3373_v17 = vrot.slane %v4026_v62, %v4927_v42  ;;  %v3377_v22 = vrot.slane %v4026_v62, %v4932_v44 }
0x1c36   : > { %v3318_v11 = vsel %vm561_vm0, %v5392_v21, 0.0  ;;  %4204 = vmatprep.subr.bf16.mxu1 %v4643_v51 }
0x1c39   : > { %3319 = vadd.xlane.f32.xlu0 %v3318_v11  ;;  %4205 = vmatpush3.bf16.msra.mxu1 %v4644_v63  ;;  %v4069_v63 = vld [vmem:[%s5543_s12 + $0x1] ss:$0 sm:$0xff] }
0x1c3a   : > { %4206 = vmatprep.subr.bf16.mxu1 %v4645_v2 }
0x1c3d   : > { %4207 = vmatpush3.bf16.msra.mxu1 %v4646_v3 }
0x1c3e   : > { %4208 = vmatprep.subr.bf16.mxu1 %v4647_v6 }
0x1c41   : > { %4209 = vmatpush3.bf16.msra.mxu1 %v4648_v43 }
0x1c42   : > { %4210 = vmatprep.subr.bf16.mxu1 %v4649_v47 }
0x1c45   : > { %4211 = vmatpush3.bf16.msra.mxu1 %v4650_v9 }
0x1c46   : > { %4212 = vmatprep.subr.bf16.mxu1 %v4651_v10 }
0x1c49   : > { %4213 = vmatpush3.bf16.msra.mxu1 %v4652_v12 }
0x1c4a   : > { %4214 = vmatprep.subr.bf16.mxu1 %v4653_v32 }
0x1c4d   : > { %4215 = vmatpush3.bf16.msra.mxu1 %v4654_v15 }
0x1cc2   : > { %v3317_v23 = vpop.xlane.xlu0 %3316 }
0x1cc3   : > { %v3321_v13 = vmul.f32 0.015625, %v3317_v23 }
0x1cc5   : > { %v3323_v14 = vsub.f32 %v5389_v19, %v3321_v13 }
0x1cc6   : > { %v3320_v24 = vpop.xlane.xlu0 %3319 }
0x1cc7   : > { %v3322_v4 = vmul.f32 0.015625, %v3320_v24  ;;  %v3325_v25 = vmul.f32 %v3323_v14, %v3323_v14 }
0x1cc9   : > { %v3324_v26 = vsub.f32 %v5392_v21, %v3322_v4  ;;  %v3327_v16 = vsel %vm561_vm0, %v3325_v25, 0.0 }
0x1cca   : > { %3328 = vadd.xlane.f32.xlu0 %v3327_v16 }
0x1ccb   : > { %v3326_v27 = vmul.f32 %v3324_v26, %v3324_v26 }
0x1ccd   : > { %v3330_v28 = vsel %vm561_vm0, %v3326_v27, 0.0 }
0x1cce   : > { %3331 = vadd.xlane.f32.xlu0 %v3330_v28 }
0x1d57   : > { %v3329_v38 = vpop.xlane.xlu0 %3328 }
0x1d58   : > { %v3333_v39 = vmul.f32 0.015625, %v3329_v38 }
0x1d5a   : > { %v3335_v40 = vadd.f32 1e-05, %v3333_v39 }
0x1d5b   : > { %v3332_v41 = vpop.xlane.xlu0 %3331 }
0x1d5c   : > { %4743 = vrsqrt.f32 %v3335_v40  ;;  %v3334_v45 = vmul.f32 0.015625, %v3332_v41 }
0x1d5e   : > { %v3336_v46 = vadd.f32 1e-05, %v3334_v45 }
0x1d60   : > { %4745 = vrsqrt.f32 %v3336_v46 }
0x1d66   : > { %v4744_v8 = vpop.eup %4743 }
0x1d67   : > { %v3339_v49 = vmul.f32 %v4744_v8, %v3323_v14 }
0x1d69   : > { %v3347_v5 = vmul.f32 %v4016_v50, %v3339_v49 }
0x1d6a   : > { %v4746_v53 = vpop.eup %4745 }
0x1d6b   : > { %v3340_v54 = vmul.f32 %v4746_v53, %v3324_v26  ;;  %v3355_v58 = vadd.f32 %v4017_v56, %v3347_v5 }
0x1d6d   : > { %v3348_v7 = vmul.f32 %v4016_v50, %v3340_v54 }
0x1d6f   : > { %v3356_v59 = vadd.f32 %v4017_v56, %v3348_v7 }
0x1d71   : > { %v3366_v60 = vpack.c.bf16 %v3356_v59, %v3355_v58 }
0x1d73   : > { %4035 = vmatmul.mubr.msk.bf16.vlgmr.msra.gmra.mrb[40].mxu0 %vm561_vm0, %v3366_v60 }
0x1d74   : > { %4395 = vmatprep.mubr.msk.bf16.mxu0 %vm4774_vm5, %v4772_v52 }
0x1e46   : > { %v3457_v0 = vpop.f32.mrb[40].mxu0 }
0x1e47   : > { %v3458_v18 = vadd.f32 %v3457_v0, %v3373_v17  ;;  %v3459_v20 = vpop.f32.mrb[41].mxu0 }
0x1e48   : > { %v3460_v1 = vadd.f32 %v3459_v20, %v3377_v22  ;;  %v3461_v11 = vpop.f32.mrb[42].mxu0 }
0x1e49   : > { %v3470_v23 = vmul.f32 0.044715, %v3458_v18  ;;  %v3462_v13 = vadd.f32 %v3461_v11, %v3373_v17  ;;  %v3463_v14 = vpop.f32.mrb[43].mxu0  ;;  %v3466_v53 = vmul.f32 0.5, %v3458_v18 }
0x1e4a   : > { %v3471_v24 = vmul.f32 0.044715, %v3460_v1  ;;  %v3464_v4 = vadd.f32 %v3463_v14, %v3377_v22  ;;  %v3467_v56 = vmul.f32 0.5, %v3460_v1  ;;  %v4656_v14 = vld [vmem:[%s5546_s15 + $0x8] sm:$0xff]  }
0x1e4b   : > { %v3474_v25 = vmul.f32 %v3470_v23, %v3458_v18  ;;  %v3472_v26 = vmul.f32 0.044715, %v3462_v13  ;;  %v3468_v5 = vmul.f32 0.5, %v3462_v13 }
0x1e4c   : > { %v3475_v16 = vmul.f32 %v3471_v24, %v3460_v1  ;;  %v3473_v27 = vmul.f32 0.044715, %v3464_v4  ;;  %v3469_v7 = vmul.f32 0.5, %v3464_v4  ;;  %v4657_v24 = vld [vmem:[%s5546_s15 + $0x10] sm:$0xff]  }
0x1e4d   : > { %v3478_v28 = vmul.f32 %v3474_v25, %v3458_v18  ;;  %v3476_v61 = vmul.f32 %v3472_v26, %v3462_v13 }
0x1e4e   : > { %v3479_v29 = vmul.f32 %v3475_v16, %v3460_v1  ;;  %v3477_v42 = vmul.f32 %v3473_v27, %v3464_v4 }
0x1e4f   : > { %v3482_v30 = vadd.f32 %v3478_v28, %v3458_v18  ;;  %v3480_v44 = vmul.f32 %v3476_v61, %v3462_v13 }
0x1e50   : > { %v3481_v31 = vmul.f32 %v3477_v42, %v3464_v4  ;;  %v3483_v33 = vadd.f32 %v3479_v29, %v3460_v1 }
0x1e51   : > { %v3486_v34 = vmul.f32 0.7978846, %v3482_v30  ;;  %v3484_v36 = vadd.f32 %v3480_v44, %v3462_v13 }
0x1e52   : > { %v3485_v37 = vadd.f32 %v3481_v31, %v3464_v4  ;;  %v3487_v38 = vmul.f32 0.7978846, %v3483_v33  ;;  %v4658_v4 = vld [vmem:[%s5546_s15 + $0x18] sm:$0xff]   ;;  %v4087_v33 = vld [vmem:[%s5545_s14] ss:$0 sm:$0xff] }
0x1e53   : > { %4747 = vtanh.f32 %v3486_v34  ;;  %v3488_v39 = vmul.f32 0.7978846, %v3484_v36 }
0x1e54   : > { %v3489_v40 = vmul.f32 0.7978846, %v3485_v37  ;;  %4749 = vtanh.f32 %v3487_v38 }
0x1e55   : > { %4751 = vtanh.f32 %v3488_v39  ;;  %v4088_v39 = vld [vmem:[%s5547_s16] ss:$0 sm:$0xff] }
0x1e56   : > { %4753 = vtanh.f32 %v3489_v40 }
0x1e5d   : > { %v4748_v41 = vpop.eup %4747 }
0x1e5e   : > { %v4750_v45 = vpop.eup %4749  ;;  %v3494_v46 = vadd.f32 1.0, %v4748_v41 }
0x1e5f   : > { %v4752_v8 = vpop.eup %4751  ;;  %v3495_v49 = vadd.f32 1.0, %v4750_v45 }
0x1e60   : > { %v4754_v50 = vpop.eup %4753  ;;  %v3496_v54 = vadd.f32 1.0, %v4752_v8  ;;  %v3498_v59 = vmul.f32 %v3494_v46, %v3466_v53 }
0x1e61   : > { %v3497_v58 = vadd.f32 1.0, %v4754_v50  ;;  %v3499_v57 = vmul.f32 %v3495_v49, %v3467_v56 }
0x1e62   : > { %v3500_v60 = vmul.f32 %v3496_v54, %v3468_v5 }
0x1e63   : > { %v3501_v55 = vmul.f32 %v3497_v58, %v3469_v7 }
0x1e64   : > { %v3535_v48 = vpack.c.bf16 %v3500_v60, %v3498_v59 }
0x1e65   : > { %v3536_v35 = vpack.c.bf16 %v3501_v55, %v3499_v57 }
0x1e67   : > { %3673 = vmatprep.mubr.bf16.mxu1 %v3536_v35 }
0x1e68   : > { %3674 = vmatmul.mubr.bf16.vlgmr.msra.gmra.mrb[44].mxu1 %v3535_v48 }
0x1f3b   : > { %v4216_v51 = vpop.f32.mrb[44].mxu1 }
0x1f3c   : > { %v4217_v2 = vpop.f32.mrb[45].mxu1 }
0x1f3d   : > { %v4218_v3 = vadd.f32 %v4217_v2, %v4216_v51  ;;  %v4219_v6 = vpop.f32.mrb[46].mxu1 }
0x1f3e   : > { %v4220_v43 = vpop.f32.mrb[47].mxu1 }
0x1f3f   : > { %v3676_v47 = vadd.f32 %v4218_v3, %v4069_v63  ;;  %v4221_v9 = vadd.f32 %v4220_v43, %v4219_v6 }
0x1f41   : > { %v3679_v10 = vadd.f32 %v4221_v9, %v4069_v63  ;;  %v3682_v12 = vadd.f32 %v3676_v47, %v5389_v19 }
0x1f43   : > { %v3686_v32 = vsel %vm561_vm0, %v3682_v12, 0.0  ;;  %v3683_v15 = vadd.f32 %v3679_v10, %v5392_v21  ;;  %v4655_v21 = vld [vmem:[%s5546_s15] sm:$0xff]  }
0x1f44   : > { %3687 = vadd.xlane.f32.xlu0 %v3686_v32  ;;  %4388 = vmatpush3.bf16.msra.mxu0 %v4655_v21 }
0x1f45   : > { %v3689_v62 = vsel %vm561_vm0, %v3683_v15, 0.0  ;;  %4389 = vmatprep.subr.bf16.mxu0 %v4772_v52 }
0x1f46   : > { %3690 = vadd.xlane.f32.xlu1 %v3689_v62 }
0x1f48   : > { %4390 = vmatpush3.bf16.msra.mxu0 %v4656_v14 }
0x1f49   : > { %4391 = vmatprep.subr.bf16.mxu0 %v4772_v52 }
0x1f4c   : > { %4392 = vmatpush3.bf16.msra.mxu0 %v4657_v24 }
0x1f4d   : > { %4393 = vmatprep.subr.bf16.mxu0 %v4772_v52  ;;  %v4086_v52 = vld [vmem:[%s5544_s13] ss:$0 sm:$0xff] }
0x1f50   : > { %4394 = vmatpush3.bf16.msra.mxu0 %v4658_v4 }
0x1fd1   : > { %v3688_v17 = vpop.xlane.xlu0 %3687 }
0x1fd2   : > { %v3692_v22 = vmul.f32 0.015625, %v3688_v17 }
0x1fd3   : > { %v3691_v0 = vpop.xlane.xlu1 %3690 }
0x1fd4   : > { %v3694_v18 = vsub.f32 %v3682_v12, %v3692_v22  ;;  %v3693_v20 = vmul.f32 0.015625, %v3691_v0 }
0x1fd6   : > { %v3695_v1 = vsub.f32 %v3683_v15, %v3693_v20  ;;  %v3696_v11 = vmul.f32 %v3694_v18, %v3694_v18 }
0x1fd8   : > { %v3698_v23 = vsel %vm561_vm0, %v3696_v11, 0.0  ;;  %v3697_v13 = vmul.f32 %v3695_v1, %v3695_v1 }
0x1fd9   : > { %3699 = vadd.xlane.f32.xlu0 %v3698_v23 }
0x1fda   : > { %v3701_v19 = vsel %vm561_vm0, %v3697_v13, 0.0 }
0x1fdd   : > { %3702 = vadd.xlane.f32.xlu0 %v3701_v19 }
0x2066   : > { %v3700_v25 = vpop.xlane.xlu0 %3699 }
0x2067   : > { %v3704_v26 = vmul.f32 0.015625, %v3700_v25 }
0x2069   : > { %v3706_v16 = vadd.f32 1e-05, %v3704_v26 }
0x206a   : > { %v3703_v27 = vpop.xlane.xlu0 %3702 }
0x206b   : > { %4755 = vrsqrt.f32 %v3706_v16  ;;  %v3705_v28 = vmul.f32 0.015625, %v3703_v27 }
0x206d   : > { %v3707_v61 = vadd.f32 1e-05, %v3705_v28 }
0x206f   : > { %4757 = vrsqrt.f32 %v3707_v61 }
0x2075   : > { %v4756_v29 = vpop.eup %4755 }
0x2076   : > { %v3710_v42 = vmul.f32 %v4756_v29, %v3694_v18 }
0x2078   : > { %v3718_v44 = vmul.f32 %v4086_v52, %v3710_v42 }
0x2079   : > { %v4758_v30 = vpop.eup %4757 }
0x207a   : > { %v3711_v31 = vmul.f32 %v4758_v30, %v3695_v1  ;;  %v3726_v36 = vadd.f32 %v4087_v33, %v3718_v44 }
0x207c   : > { %v3719_v34 = vmul.f32 %v4086_v52, %v3711_v31 }
0x207e   : > { %v3727_v37 = vadd.f32 %v4087_v33, %v3719_v34 }
0x2080   : > { %v3736_v38 = vpack.c.bf16 %v3727_v37, %v3726_v36 }
0x2082   : > { %4396 = vmatmul.mubr.msk.bf16.vlgmr.msra.gmra.mrb[44].mxu0 %vm561_vm0, %v3736_v38 }
0x2155   : > { %v3805_v40 = vpop.f32.mrb[44].mxu0 }
0x2156   : > { %v3806_v41 = vadd.f32 %v4088_v39, %v3805_v40  ;;  %v4397_v45 = vpop.f32.mrb[45].mxu0 }
0x2157   : > { %v3808_v46 = vpop.f32.mrb[46].mxu0 }
0x2158   : > { %3812 = vst [vmem:[%s548_s23] sm:$0xff] %v3806_v41  ;;  %v3809_v8 = vadd.f32 %v4088_v39, %v3808_v46  ;;  %v4398_v49 = vpop.f32.mrb[47].mxu0 }
0x215a   : > { %3813 = vst [vmem:[%s548_s23 + $0x8] sm:$0xff] %v3809_v8 }
0x215b PF: > { %s27_s24 = sadd.s32 1, %s4765_s24  }
0x215c   : > { %p24_p4 = scmp.ge.s32.totalorder %s27_s24, 4  }
0x215e   :  { %26 = sbr.rel (!%p24_p4) target bundleno = 3 (0x3), region = 130 }

</bundles_post_ra>
